<compile_context>
chip_gen: v7x
topology: tpu7x:2x2x1
jax: 0.10.0
libtpu: 0.0.40
codegen_flags: <defaults>
</compile_context>

<pallas_src>
import math

import jax
import jax.numpy as jnp
from jax.experimental import pallas as pl
from jax.experimental.pallas import tpu as pltpu

# Problem sizes (small, consistent with the module's forward).
D = 4              # input_dim
F = 8              # num_freq_bands
H = 32             # hidden_dim
N = 64             # number of rows (nodes)
TN = 32            # row tile  -> grid = (2,): both v7x TensorCores engaged
KX = 8             # continuous inputs padded from D=4 to 8 lanes
W = D * H          # 128: fused (lane-dense) activation width
EPS = 1e-5         # LayerNorm eps (PyTorch default)
_HI = jax.lax.Precision.HIGHEST   # only for phase / LN-statistics matmuls


def fourier_embedding_kernel(xp_ref, cat_ref, wm_ref, ws_ref, v_ref, out_ref):
    """All refs are VMEM tiles.

    xp_ref  : [TN, 8]    continuous inputs (lanes 4:8 zero-padded)
    cat_ref : [TN, 128]  categorical-embedding sum, replicated 4x along lanes
    wm_ref  : [640, 128] packed big weights: [W1C; W1S; W2REP; WO_blockdiag; AVG]
    ws_ref  : [16, 128]  packed small weights: [RF(2*pi*freqs selector); W1X]
    v_ref   : [8, 128]   packed vectors: b1 | g1 | be1 | sum(b2) | go | bo | boo | pad
    out_ref : [TN, 128]  output, 4x lane-replicated (wrapper keeps lanes [:H])
    """
    f32 = jnp.float32
    xp = xp_ref[...]                            # [TN, 8]

    rf = ws_ref[0:8, :]                         # [8, 128]   phase selector (2*pi*freqs)
    w1x = ws_ref[8:16, :]                       # [8, 128]   x-passthrough column of Linear1
    w1c = wm_ref[0:128, :]                      # [128, 128] cos block (block-diagonal)
    w1s = wm_ref[128:256, :]                    # [128, 128] sin block (block-diagonal)
    w2r = wm_ref[256:384, :]                    # [128, 128] stacked Linear2, columns tiled 4x
    wob = wm_ref[384:512, :]                    # [128, 128] to_out Linear, block-diagonal
    avg = wm_ref[512:640, :]                    # [128, 128] block-diag 1/H averaging matrix

    b1 = v_ref[0:1, :]
    g1 = v_ref[1:2, :]
    be1 = v_ref[2:3, :]
    b2s = v_ref[3:4, :]
    go = v_ref[4:5, :]
    bo = v_ref[5:6, :]
    boo = v_ref[6:7, :]

    # Phases for every (input dim, freq band) packed along lanes:
    # lane i*F+f = 2*pi * x_i * freqs[i, f].  Replaces an elementwise broadcast-mul,
    # so it is computed at HIGHEST precision (K=8, negligible cost).
    phase = jnp.dot(xp, rf, preferred_element_type=f32, precision=_HI)      # [TN, 128]

    # Fused per-dim first Linear (block-diagonal weights). Default MXU precision.
    h = (jnp.dot(jnp.cos(phase), w1c, preferred_element_type=f32)
         + jnp.dot(jnp.sin(phase), w1s, preferred_element_type=f32)
         + jnp.dot(xp, w1x, preferred_element_type=f32)
         + b1)                                                              # [TN, 128]

    # Grouped LayerNorm over each 32-lane (per-input-dim) block, done with a
    # block-diagonal averaging matmul so the activation stays flat/lane-dense.
    # These replace jnp.mean reductions -> HIGHEST precision for f32-accurate stats.
    mu = jnp.dot(h, avg, preferred_element_type=f32, precision=_HI)
    d = h - mu
    var = jnp.dot(d * d, avg, preferred_element_type=f32, precision=_HI)
    hr = jnp.maximum(d * jax.lax.rsqrt(var + EPS) * g1 + be1, 0.0)          # [TN, 128]

    # Fused second Linear + sum over input dims (the sum IS the K=128 contraction).
    # Columns are replicated 4x so the result stays a full 128-lane slab.
    acc = jnp.dot(hr, w2r, preferred_element_type=f32) + b2s + cat_ref[...]  # [TN, 128]

    # to_out: LayerNorm + ReLU + Linear.  Lanes hold 4 identical copies of the
    # H-vector, so row-wise mean/var over 128 lanes equal the per-H statistics.
    mu2 = jnp.mean(acc, axis=-1, keepdims=True)
    d2 = acc - mu2
    var2 = jnp.mean(d2 * d2, axis=-1, keepdims=True)
    y = jnp.maximum(d2 * jax.lax.rsqrt(var2 + EPS) * go + bo, 0.0)
    y = jnp.dot(y, wob, preferred_element_type=f32) + boo                   # [TN, 128]
    out_ref[...] = y.astype(out_ref.dtype)                                  # unmasked vst


def pack_params(p):
    """Host-side repacking of the per-dim MLP weights into fused lane-dense slabs."""
    f32 = jnp.float32
    two_pi = 2.0 * math.pi

    rf = jnp.zeros((KX, W), f32)
    w1x = jnp.zeros((KX, W), f32)
    w1c = jnp.zeros((W, W), f32)
    w1s = jnp.zeros((W, W), f32)
    for i in range(D):
        rf = rf.at[i, i * F:(i + 1) * F].set(two_pi * p["freqs"][i])
        w1x = w1x.at[i, i * H:(i + 1) * H].set(p["w1"][i, 2 * F, :])
        w1c = w1c.at[i * F:(i + 1) * F, i * H:(i + 1) * H].set(p["w1"][i, :F, :])
        w1s = w1s.at[i * F:(i + 1) * F, i * H:(i + 1) * H].set(p["w1"][i, F:2 * F, :])

    w2rep = jnp.tile(p["w2"].reshape(D * H, H), (1, D))                        # [128,128]
    wobd = jnp.kron(jnp.eye(D, dtype=f32), p["wo"])                            # [128,128]
    avg = jnp.kron(jnp.eye(D, dtype=f32), jnp.full((H, H), 1.0 / H, f32))      # [128,128]

    wmats = jnp.concatenate([w1c, w1s, w2rep, wobd, avg], axis=0)              # [640,128]
    wsmall = jnp.concatenate([rf, w1x], axis=0)                                # [16,128]
    vecs = jnp.stack([
        p["b1"].reshape(W),
        p["g1"].reshape(W),
        p["be1"].reshape(W),
        jnp.tile(jnp.sum(p["b2"], axis=0), D),
        jnp.tile(p["go"][0], D),
        jnp.tile(p["bo"][0], D),
        jnp.tile(p["boo"][0], D),
        jnp.zeros((W,), f32),
    ], axis=0)                                                                 # [8,128]
    return wmats, wsmall, vecs


def fourier_embedding(x, cat_sum, params):
    """x: [N, D] float32, cat_sum: [N, H] float32 (sum of categorical embeddings)."""
    n = x.shape[0]
    assert n % TN == 0 and TN % 8 == 0
    wmats, wsmall, vecs = pack_params(params)

    # Layout plumbing (wrapper side): pad inputs to 8 lanes, replicate cat 4x so the
    # kernel only ever touches 128-lane-dense slabs.
    xp = jnp.zeros((n, KX), jnp.float32).at[:, :D].set(x)
    cat_rep = jnp.tile(cat_sum, (1, D))

    out = pl.pallas_call(
        fourier_embedding_kernel,
        out_shape=jax.ShapeDtypeStruct((n, W), jnp.float32),
        grid_spec=pltpu.PrefetchScalarGridSpec(
            num_scalar_prefetch=0,
            grid=(n // TN,),
            in_specs=[
                pl.BlockSpec((TN, KX), lambda i: (i, 0)),       # xp
                pl.BlockSpec((TN, W), lambda i: (i, 0)),        # cat (replicated 4x)
                pl.BlockSpec((5 * W, W), lambda i: (0, 0)),     # big weight slab
                pl.BlockSpec((2 * KX, W), lambda i: (0, 0)),    # small weight slab
                pl.BlockSpec((8, W), lambda i: (0, 0)),         # bias/gamma/beta slab
            ],
            out_specs=pl.BlockSpec((TN, W), lambda i: (i, 0)),
        ),
        compiler_params=pltpu.CompilerParams(
            dimension_semantics=("parallel",)),
    )(xp, cat_rep, wmats, wsmall, vecs)
    return out[:, :H]   # the 4 lane groups are identical copies; keep the first


def _layernorm(h, gamma, beta):
    mu = jnp.mean(h, axis=-1, keepdims=True)
    var = jnp.mean((h - mu) ** 2, axis=-1, keepdims=True)
    return (h - mu) * jax.lax.rsqrt(var + EPS) * gamma + beta


def fourier_embedding_reference(x, cat_sum, p):
    """Pure-JAX reference mirroring the PyTorch forward (per-dim loop)."""
    two_pi = 2.0 * math.pi
    acc = cat_sum
    for i in range(D):
        xi = x[:, i:i + 1]
        phase = xi * p["freqs"][i][None, :] * two_pi
        feat = jnp.concatenate([jnp.cos(phase), jnp.sin(phase), xi], axis=-1)
        h = feat @ p["w1"][i] + p["b1"][i]
        h = jnp.maximum(_layernorm(h, p["g1"][i], p["be1"][i]), 0.0)
        acc = acc + h @ p["w2"][i] + p["b2"][i]
    y = jnp.maximum(_layernorm(acc, p["go"][0], p["bo"][0]), 0.0)
    return y @ p["wo"] + p["boo"][0]


def init_params(key):
    ks = jax.random.split(key, 8)
    scale = 0.05
    return {
        "freqs": scale * jax.random.normal(ks[0], (D, F), jnp.float32),
        "w1": scale * jax.random.normal(ks[1], (D, 2 * F + 1, H), jnp.float32),
        "b1": scale * jax.random.normal(ks[2], (D, H), jnp.float32),
        "g1": jnp.ones((D, H), jnp.float32),
        "be1": jnp.zeros((D, H), jnp.float32),
        "w2": scale * jax.random.normal(ks[3], (D, H, H), jnp.float32),
        "b2": scale * jax.random.normal(ks[4], (D, H), jnp.float32),
        "go": jnp.ones((1, H), jnp.float32),
        "bo": jnp.zeros((1, H), jnp.float32),
        "wo": scale * jax.random.normal(ks[5], (H, H), jnp.float32),
        "boo": scale * jax.random.normal(ks[6], (1, H), jnp.float32),
    }


if __name__ == "__main__":
    key = jax.random.PRNGKey(0)
    k_param, k_x, k_c1, k_c2 = jax.random.split(key, 4)

    params = init_params(k_param)

    # continuous_inputs: [N, input_dim]
    x = jax.random.normal(k_x, (N, D), jnp.float32)
    # two categorical embeddings [N, H]; the forward sums them before the add.
    cat_embs = [0.1 * jax.random.normal(k_c1, (N, H), jnp.float32),
                0.1 * jax.random.normal(k_c2, (N, H), jnp.float32)]
    cat_sum = jnp.sum(jnp.stack(cat_embs), axis=0)

    out = fourier_embedding(x, cat_sum, params)
    out = jax.block_until_ready(out)

    ref = fourier_embedding_reference(x, cat_sum, params)
    assert out.shape == (N, H)
    # Heavy matmuls run at default MXU precision (bf16 passes) per the performance
    # guidance; tolerance reflects bf16-accumulation differences vs. the reference.
    assert jnp.allclose(out, ref, atol=5e-3, rtol=5e-3), (
        float(jnp.max(jnp.abs(out - ref))))

    print("KERNEL_OK")
</pallas_src>

<mosaic_0001>
module attributes {stable_mosaic.version = 11 : i64} {
  func.func @fourier_embedding_kernel(%arg0: i32, %arg1: memref<32x8xf32, #tpu.memory_space<vmem>>, %arg2: memref<32x128xf32, #tpu.memory_space<vmem>>, %arg3: memref<640x128xf32, #tpu.memory_space<vmem>>, %arg4: memref<16x128xf32, #tpu.memory_space<vmem>>, %arg5: memref<8x128xf32, #tpu.memory_space<vmem>>, %arg6: memref<32x128xf32, #tpu.memory_space<vmem>>) attributes {dimension_semantics = [#tpu.dimension_semantics<parallel>], iteration_bounds = array<i64: 2>, scalar_prefetch = 0 : i64, scratch_operands = 0 : i64, tpu.core_type = #tpu.core_type<tc>, window_params = [{transform_indices = @transform_0, window_bounds = array<i64: 32, 8>}, {transform_indices = @transform_1, window_bounds = array<i64: 32, 128>}, {pipeline_mode = #tpu.pipeline_mode<synchronous>, transform_indices = @transform_2, window_bounds = array<i64: 640, 128>}, {pipeline_mode = #tpu.pipeline_mode<synchronous>, transform_indices = @transform_3, window_bounds = array<i64: 16, 128>}, {pipeline_mode = #tpu.pipeline_mode<synchronous>, transform_indices = @transform_4, window_bounds = array<i64: 8, 128>}, {transform_indices = @transform_5, window_bounds = array<i64: 32, 128>}]} {
    %c0 = arith.constant 0 : index
    %c0_0 = arith.constant 0 : index
    %0 = vector.load %arg1[%c0, %c0_0] : memref<32x8xf32, #tpu.memory_space<vmem>>, vector<32x8xf32>
    %c0_1 = arith.constant 0 : index
    %c0_2 = arith.constant 0 : index
    %1 = vector.load %arg4[%c0_1, %c0_2] : memref<16x128xf32, #tpu.memory_space<vmem>>, vector<8x128xf32>
    %c8 = arith.constant 8 : index
    %c0_3 = arith.constant 0 : index
    %2 = vector.load %arg4[%c8, %c0_3] : memref<16x128xf32, #tpu.memory_space<vmem>>, vector<8x128xf32>
    %c0_4 = arith.constant 0 : index
    %c0_5 = arith.constant 0 : index
    %3 = vector.load %arg3[%c0_4, %c0_5] : memref<640x128xf32, #tpu.memory_space<vmem>>, vector<128x128xf32>
    %c128 = arith.constant 128 : index
    %c0_6 = arith.constant 0 : index
    %4 = vector.load %arg3[%c128, %c0_6] : memref<640x128xf32, #tpu.memory_space<vmem>>, vector<128x128xf32>
    %c256 = arith.constant 256 : index
    %c0_7 = arith.constant 0 : index
    %5 = vector.load %arg3[%c256, %c0_7] : memref<640x128xf32, #tpu.memory_space<vmem>>, vector<128x128xf32>
    %c384 = arith.constant 384 : index
    %c0_8 = arith.constant 0 : index
    %6 = vector.load %arg3[%c384, %c0_8] : memref<640x128xf32, #tpu.memory_space<vmem>>, vector<128x128xf32>
    %c512 = arith.constant 512 : index
    %c0_9 = arith.constant 0 : index
    %7 = vector.load %arg3[%c512, %c0_9] : memref<640x128xf32, #tpu.memory_space<vmem>>, vector<128x128xf32>
    %c0_10 = arith.constant 0 : index
    %c0_11 = arith.constant 0 : index
    %8 = vector.load %arg5[%c0_10, %c0_11] : memref<8x128xf32, #tpu.memory_space<vmem>>, vector<1x128xf32>
    %c1 = arith.constant 1 : index
    %c0_12 = arith.constant 0 : index
    %9 = vector.load %arg5[%c1, %c0_12] : memref<8x128xf32, #tpu.memory_space<vmem>>, vector<1x128xf32>
    %c2 = arith.constant 2 : index
    %c0_13 = arith.constant 0 : index
    %10 = vector.load %arg5[%c2, %c0_13] : memref<8x128xf32, #tpu.memory_space<vmem>>, vector<1x128xf32>
    %c3 = arith.constant 3 : index
    %c0_14 = arith.constant 0 : index
    %11 = vector.load %arg5[%c3, %c0_14] : memref<8x128xf32, #tpu.memory_space<vmem>>, vector<1x128xf32>
    %c4 = arith.constant 4 : index
    %c0_15 = arith.constant 0 : index
    %12 = vector.load %arg5[%c4, %c0_15] : memref<8x128xf32, #tpu.memory_space<vmem>>, vector<1x128xf32>
    %c5 = arith.constant 5 : index
    %c0_16 = arith.constant 0 : index
    %13 = vector.load %arg5[%c5, %c0_16] : memref<8x128xf32, #tpu.memory_space<vmem>>, vector<1x128xf32>
    %c6 = arith.constant 6 : index
    %c0_17 = arith.constant 0 : index
    %14 = vector.load %arg5[%c6, %c0_17] : memref<8x128xf32, #tpu.memory_space<vmem>>, vector<1x128xf32>
    %cst = arith.constant dense<0.000000e+00> : vector<32x128xf32>
    %15 = tpu.matmul %0, %1, %cst {dimension_numbers = #tpu.dot_dimension_numbers<[1], [0], [0], [1], [0, 0, 1, 1], [], []>, precision = #tpu.contract_precision<fp32>} : vector<32x8xf32>, vector<8x128xf32>, vector<32x128xf32> -> vector<32x128xf32>
    %16 = math.cos %15 : vector<32x128xf32>
    %cst_18 = arith.constant dense<0.000000e+00> : vector<32x128xf32>
    %17 = tpu.matmul %16, %3, %cst_18 {dimension_numbers = #tpu.dot_dimension_numbers<[1], [0], [0], [1], [0, 0, 1, 1], [], []>} : vector<32x128xf32>, vector<128x128xf32>, vector<32x128xf32> -> vector<32x128xf32>
    %18 = math.sin %15 : vector<32x128xf32>
    %cst_19 = arith.constant dense<0.000000e+00> : vector<32x128xf32>
    %19 = tpu.matmul %18, %4, %cst_19 {dimension_numbers = #tpu.dot_dimension_numbers<[1], [0], [0], [1], [0, 0, 1, 1], [], []>} : vector<32x128xf32>, vector<128x128xf32>, vector<32x128xf32> -> vector<32x128xf32>
    %20 = arith.addf %17, %19 : vector<32x128xf32>
    %cst_20 = arith.constant dense<0.000000e+00> : vector<32x128xf32>
    %21 = tpu.matmul %0, %2, %cst_20 {dimension_numbers = #tpu.dot_dimension_numbers<[1], [0], [0], [1], [0, 0, 1, 1], [], []>} : vector<32x8xf32>, vector<8x128xf32>, vector<32x128xf32> -> vector<32x128xf32>
    %22 = arith.addf %20, %21 : vector<32x128xf32>
    %23 = vector.broadcast %8 : vector<1x128xf32> to vector<32x128xf32>
    %24 = arith.addf %22, %23 : vector<32x128xf32>
    %cst_21 = arith.constant dense<0.000000e+00> : vector<32x128xf32>
    %25 = tpu.matmul %24, %7, %cst_21 {dimension_numbers = #tpu.dot_dimension_numbers<[1], [0], [0], [1], [0, 0, 1, 1], [], []>, precision = #tpu.contract_precision<fp32>} : vector<32x128xf32>, vector<128x128xf32>, vector<32x128xf32> -> vector<32x128xf32>
    %26 = arith.subf %24, %25 : vector<32x128xf32>
    %27 = arith.mulf %26, %26 : vector<32x128xf32>
    %cst_22 = arith.constant dense<0.000000e+00> : vector<32x128xf32>
    %28 = tpu.matmul %27, %7, %cst_22 {dimension_numbers = #tpu.dot_dimension_numbers<[1], [0], [0], [1], [0, 0, 1, 1], [], []>, precision = #tpu.contract_precision<fp32>} : vector<32x128xf32>, vector<128x128xf32>, vector<32x128xf32> -> vector<32x128xf32>
    %cst_23 = arith.constant 9.99999974E-6 : f32
    %29 = vector.broadcast %cst_23 : f32 to vector<32x128xf32>
    %30 = arith.addf %28, %29 : vector<32x128xf32>
    %31 = math.rsqrt %30 : vector<32x128xf32>
    %32 = arith.mulf %26, %31 : vector<32x128xf32>
    %33 = vector.broadcast %9 : vector<1x128xf32> to vector<32x128xf32>
    %34 = arith.mulf %32, %33 : vector<32x128xf32>
    %35 = vector.broadcast %10 : vector<1x128xf32> to vector<32x128xf32>
    %36 = arith.addf %34, %35 : vector<32x128xf32>
    %cst_24 = arith.constant 0.000000e+00 : f32
    %37 = vector.broadcast %cst_24 : f32 to vector<32x128xf32>
    %38 = arith.maximumf %36, %37 : vector<32x128xf32>
    %cst_25 = arith.constant dense<0.000000e+00> : vector<32x128xf32>
    %39 = tpu.matmul %38, %5, %cst_25 {dimension_numbers = #tpu.dot_dimension_numbers<[1], [0], [0], [1], [0, 0, 1, 1], [], []>} : vector<32x128xf32>, vector<128x128xf32>, vector<32x128xf32> -> vector<32x128xf32>
    %40 = vector.broadcast %11 : vector<1x128xf32> to vector<32x128xf32>
    %41 = arith.addf %39, %40 : vector<32x128xf32>
    %c0_26 = arith.constant 0 : index
    %c0_27 = arith.constant 0 : index
    %42 = vector.load %arg2[%c0_26, %c0_27] : memref<32x128xf32, #tpu.memory_space<vmem>>, vector<32x128xf32>
    %43 = arith.addf %41, %42 : vector<32x128xf32>
    %cst_28 = arith.constant dense<0.000000e+00> : vector<32xf32>
    %44 = vector.multi_reduction <add>, %43, %cst_28 [1] : vector<32x128xf32> to vector<32xf32>
    %45 = vector.shape_cast %44 : vector<32xf32> to vector<32x1xf32>
    %cst_29 = arith.constant 1.280000e+02 : f32
    %46 = vector.broadcast %cst_29 : f32 to vector<32x1xf32>
    %47 = arith.divf %45, %46 : vector<32x1xf32>
    %48 = vector.broadcast %47 : vector<32x1xf32> to vector<32x128xf32>
    %49 = arith.subf %43, %48 : vector<32x128xf32>
    %50 = arith.mulf %49, %49 : vector<32x128xf32>
    %cst_30 = arith.constant dense<0.000000e+00> : vector<32xf32>
    %51 = vector.multi_reduction <add>, %50, %cst_30 [1] : vector<32x128xf32> to vector<32xf32>
    %52 = vector.shape_cast %51 : vector<32xf32> to vector<32x1xf32>
    %cst_31 = arith.constant 1.280000e+02 : f32
    %53 = vector.broadcast %cst_31 : f32 to vector<32x1xf32>
    %54 = arith.divf %52, %53 : vector<32x1xf32>
    %cst_32 = arith.constant 9.99999974E-6 : f32
    %55 = vector.broadcast %cst_32 : f32 to vector<32x1xf32>
    %56 = arith.addf %54, %55 : vector<32x1xf32>
    %57 = math.rsqrt %56 : vector<32x1xf32>
    %58 = vector.broadcast %57 : vector<32x1xf32> to vector<32x128xf32>
    %59 = arith.mulf %49, %58 : vector<32x128xf32>
    %60 = vector.broadcast %12 : vector<1x128xf32> to vector<32x128xf32>
    %61 = arith.mulf %59, %60 : vector<32x128xf32>
    %62 = vector.broadcast %13 : vector<1x128xf32> to vector<32x128xf32>
    %63 = arith.addf %61, %62 : vector<32x128xf32>
    %cst_33 = arith.constant 0.000000e+00 : f32
    %64 = vector.broadcast %cst_33 : f32 to vector<32x128xf32>
    %65 = arith.maximumf %63, %64 : vector<32x128xf32>
    %cst_34 = arith.constant dense<0.000000e+00> : vector<32x128xf32>
    %66 = tpu.matmul %65, %6, %cst_34 {dimension_numbers = #tpu.dot_dimension_numbers<[1], [0], [0], [1], [0, 0, 1, 1], [], []>} : vector<32x128xf32>, vector<128x128xf32>, vector<32x128xf32> -> vector<32x128xf32>
    %67 = vector.broadcast %14 : vector<1x128xf32> to vector<32x128xf32>
    %68 = arith.addf %66, %67 : vector<32x128xf32>
    %c0_35 = arith.constant 0 : index
    %c0_36 = arith.constant 0 : index
    %69 = vector.load %arg6[%c0_35, %c0_36] : memref<32x128xf32, #tpu.memory_space<vmem>>, vector<32x128xf32>
    tpu.vector_store %arg6[%c0_35, %c0_36], %68 {strides = array<i32>} : memref<32x128xf32, #tpu.memory_space<vmem>>, vector<32x128xf32>,
    return
  }
  func.func @transform_0(%arg0: i32) -> (i32, i32) {
    %c0_i32 = arith.constant 0 : i32
    %c0_i32_0 = arith.constant 0 : i32
    return %arg0, %c0_i32 : i32, i32
  }
  func.func @transform_1(%arg0: i32) -> (i32, i32) {
    %c0_i32 = arith.constant 0 : i32
    %c0_i32_0 = arith.constant 0 : i32
    return %arg0, %c0_i32 : i32, i32
  }
  func.func @transform_2(%arg0: i32) -> (i32, i32) {
    %c0_i32 = arith.constant 0 : i32
    %c0_i32_0 = arith.constant 0 : i32
    %c0_i32_1 = arith.constant 0 : i32
    return %c0_i32, %c0_i32_0 : i32, i32
  }
  func.func @transform_3(%arg0: i32) -> (i32, i32) {
    %c0_i32 = arith.constant 0 : i32
    %c0_i32_0 = arith.constant 0 : i32
    %c0_i32_1 = arith.constant 0 : i32
    return %c0_i32, %c0_i32_0 : i32, i32
  }
  func.func @transform_4(%arg0: i32) -> (i32, i32) {
    %c0_i32 = arith.constant 0 : i32
    %c0_i32_0 = arith.constant 0 : i32
    %c0_i32_1 = arith.constant 0 : i32
    return %c0_i32, %c0_i32_0 : i32, i32
  }
  func.func @transform_5(%arg0: i32) -> (i32, i32) {
    %c0_i32 = arith.constant 0 : i32
    %c0_i32_0 = arith.constant 0 : i32
    return %arg0, %c0_i32 : i32, i32
  }
}

</mosaic_0001>

<bundles_post_ra>
// kernel: tpu_custom_call.1
= control target key start
LH: loop header
LB: loop body
LE: loop exit
PB: predicated region body
PF: predicated region fallthrough
CT: control target
= control target key end

     0   :  { %10 = vsyncpa [#allocation3], 0  ;;  %s7184_s0 = inlined_call_operand.vmem [shape: f32[64,8], index: 0, kind: input, shape index: {}]   ;;  %s7185_s1 = inlined_call_operand.vmem [shape: f32[64,128], index: 1, kind: input, shape index: {}]   ;;  %s7186_s2 = inlined_call_operand.hbm [shape: f32[640,128], index: 2, kind: input, shape index: {}]   ;;  %s7187_s3 = inlined_call_operand.vmem [shape: f32[16,128], index: 3, kind: input, shape index: {}]   ;;  %s7188_s4 = inlined_call_operand.hbm [shape: f32[8,128], index: 4, kind: input, shape index: {}]   ;;  %s7189_s5 = inlined_call_operand.hbm [shape: f32[64,128], index: 5, kind: output, shape index: {}]  }
   0x1   :  { %11 = vsyncpa [#allocation6], 0 }
   0x2   :  { %12 = vsyncpa [#allocation4], 0 }
   0x3   :  { %14 = vsyncpa [#allocation4 + $0x1], 0  ;;  %s5947_s18 = smov 0   ;;  %s5949_s19 = smov 0  }
   0x4   :  { %s5951_s20 = smov 0   ;;  %s5953_s21 = smov 0  }
   0x5 LB: > { %s5968_s22 = sadd.s32 4294967295, %s5902_s21   ;;  %s3993_s23 = sadd.s32 4294967294, %s5902_s21   ;;  %s5902_s21 = sphi %s5953_s21, %s7245_s21   ;;  %s5898_s20 = sphi %s5951_s20, %s7244_s20   ;;  %s5894_s19 = sphi %s5949_s19, %s7243_s19   ;;  %s5890_s18 = sphi %s5947_s18, %s7242_s18  }
   0x6   : > { %s5972_s24 = sadd.s32 1, %s5902_s21   ;;  %s142_s25 = sadd.s32 1, %s5898_s20 }
   0x7   : > { %s139_s26 = ssub.s32 %s5902_s21, %s5972_s24  ;;  %p152_p0 = scmp.ne.s32.totalorder %s5898_s20, %s5894_s19 }
   0x8   : > { %p140_p1 = scmp.eq.s32.totalorder %s139_s26, 0  ;;  %p153_p2 = scmp.eq.s32.totalorder %s5968_s22, 1 }
   0x9   : > { %p158_p3 = scmp.ne.s32.totalorder %s5894_s19, %s5890_s18  ;;  %p159_p4 = scmp.eq.s32.totalorder %s3993_s23, 1 }
   0xa   : > { %s5983_s27 = scalar_select %p140_p1, %s5898_s20, %s142_s25  }
   0xb   : > { %p5985_p5 = por %p153_p2, %p152_p0  ;;  %p5989_p6 = por %p159_p4, %p158_p3 }
   0xc   : > { %p3994_p7 = scmp.ge.s32.totalorder %s5902_s21, 1  ;;  %p166_p8 = scmp.lt.s32.totalorder %s5902_s21, 3 }
   0xd   : > { %s7209_s28 = scalar_select %p5985_p5, 1, 0 }
   0xe   : > { %s7210_s29 = scalar_select %p5989_p6, 1, 0 }
   0xf   : > { %p7190_p9 = scmp.eq.s32.totalorder %s5968_s22, 0  ;;  %p5996_p10 = pnand %p3994_p7, %p166_p8 }
  0x10   : > { %s5904_s6 = smov [#allocation2]   ;;  %s5905_s9 = smov [#allocation5]  }
  0x11   : > { %s7211_s30 = scalar_select %p5996_p10, 1, 0 }
  0x12   : > { %s178_s7 = sshll.u32 %s5904_s6, 4  ;;  %p5684_p11 = pneg %p5996_p10  ;;  %s179_s7 = int_to_ptr.vmem [resolvable:$true] %s178_s7 }
  0x13   : > { %s195_s10 = sshll.u32 %s5905_s9, 4  ;;  %s5776_s13 = scalar_lea.hbm %s7186_s2, 10240  ;;  %s6008_s10 = int_to_ptr.vmem [resolvable:$true] %s195_s10 }
  0x14   : > { %p6004_p12 = pnand %p7190_p9, %p5684_p11  ;;  %p5777_p13 = scmp.ne.s32.totalorder %s7186_s2, %s5776_s13 }
  0x15   : > { %p5783_p3 = scmp.lt.u32.totalorder %s5776_s13, %s7186_s2 }
  0x16   : > { %p5778_p0 = pneg %p6004_p12 }
  0x18   : > { %p5779_p1 = pnand %p5778_p0, %p5777_p13 }
  0x1a   : > { %p5780_p2 = pneg %p5779_p1 }
  0x1c   : > { %p5785_p4 = pnand %p5783_p3, %p5780_p2 }
  0x1e   : > { %5788 = shalt.err (!%p5785_p4)
}
  0x1f   : > { %s5789_s23 = scalar_lea.vmem %s179_s7, 10240  ;;  %p5797_p9 = scmp.lt.s32.totalorder %s179_s7, %s179_s7 }
  0x20   : > { %p5790_p7 = scmp.ne.s32.totalorder %s179_s7, %s5789_s23  ;;  %p5798_p6 = scmp.lt.s32.totalorder %s5789_s23, %s5789_s23 }
  0x22   : > { %p5792_p8 = pnand %p5790_p7, %p5778_p0  ;;  %p5799_p5 = por %p5798_p6, %p5797_p9 }
  0x24   : > { %p5793_p11 = pneg %p5792_p8 }
  0x26   : > { %p5800_p10 = pnand %p5799_p5, %p5793_p11 }
  0x28   : > { %5803 = shalt.err (!%p5800_p10)
}
  0x29   : > { %s5906_s25 = smov 128   ;;  %s5907_s26 = smov 8  }
  0x2a   : > { %5687 = dma.hbm_to_vmem [thread:$0]  (!%p6004_p12), %s7186_s2, 10240, %s179_s7, [#allocation3], %s5906_s25, %s5906_s25, %s5907_s26  }
  0x2b   : > { %s5804_s13 = scalar_lea.hbm %s7188_s4, 128 }
  0x2c   : > { %p5805_p13 = scmp.ne.s32.totalorder %s7188_s4, %s5804_s13  ;;  %p5811_p9 = scmp.lt.u32.totalorder %s5804_s13, %s7188_s4 }
  0x2e   : > { %p5807_p5 = pnand %p5805_p13, %p5778_p0 }
  0x30   : > { %p5808_p6 = pneg %p5807_p5 }
  0x32   : > { %p5813_p10 = pnand %p5811_p9, %p5808_p6 }
  0x34   : > { %5816 = shalt.err (!%p5813_p10)
}
  0x35   : > { %s5817_s7 = scalar_lea.vmem %s6008_s10, 128  ;;  %p5825_p4 = scmp.lt.s32.totalorder %s6008_s10, %s6008_s10 }
  0x36   : > { %p5818_p1 = scmp.ne.s32.totalorder %s6008_s10, %s5817_s7  ;;  %p5826_p7 = scmp.lt.s32.totalorder %s5817_s7, %s5817_s7 }
  0x38   : > { %p5820_p2 = pnand %p5818_p1, %p5778_p0  ;;  %p5827_p8 = por %p5826_p7, %p5825_p4 }
  0x3a   : > { %p5821_p3 = pneg %p5820_p2 }
  0x3c   : > { %p5828_p11 = pnand %p5827_p8, %p5821_p3 }
  0x3e   : > { %5831 = shalt.err (!%p5828_p11)
}
  0x3f   : > { %5690 = dma.hbm_to_vmem [thread:$0]  (!%p6004_p12), %s7188_s4, 128, %s6008_s10, [#allocation6]  }
  0x40   : > { %p7213_p13 = scmp.ne.s32.totalorder %s7211_s30, 0 }
  0x41   : > { %p7214_p5 = scmp.eq.s32.totalorder (!%p7213_p13), %s5968_s22, 0 }
  0x42   : > { %226 = sbr.rel (%p7213_p13) target bundleno = 2264 (0x8d8), region = 40 }
  0x49   : > { %5877 = dma.done.wait (%p7214_p5), [#allocation3], 10240   ;;  %p7215_p0 = pmov %p7214_p5 }
  0x4b   : > { %5879 = vsyncadd (%p7215_p0), [#allocation3], 4294957056  ;;  %p7216_p6 = pmov %p7215_p0 }
  0x4c   : > { %p7217_p9 = pmov %p7215_p0 }
  0x4d   : > { %5881 = dma.done.wait (%p7216_p6), [#allocation6], 128  }
  0x4e   : > { %5883 = vsyncadd (%p7217_p9), [#allocation6], 4294967168  ;;  %s4002_s8 = sshll.u32 %s5968_s22, 2  ;;  %vm369_vm0 = vcmask 64512   ;;  %v280_v0 = vld [vmem:[%s7187_s3] sm:$0xff]  ;;  %v298_v34 = vld [vmem:[#allocation2 + $0x80] sm:$0xff] }
  0x4f   : > { %p264_p10 = scmp.lt.s32.totalorder %s4002_s8, 7  ;;  %v383_v3 = vand.u32 4294901760, %v280_v0  ;;  %v299_v35 = vld [vmem:[#allocation2 + $0x88] sm:$0xff]  ;;  %v300_v37 = vld [vmem:[#allocation2 + $0x90] sm:$0xff]  ;;  %v301_v38 = vld [vmem:[#allocation2 + $0x98] sm:$0xff]  ;;  %s260_s17 = sand.u32 1, %s5894_s19  }
  0x50   : > { %v5074_v36 = vpack.c.bf16 %v299_v35, %v298_v34  ;;  %v5078_v39 = vpack.c.bf16 %v301_v38, %v300_v37  ;;  %v302_v40 = vld [vmem:[#allocation2 + $0xa0] sm:$0xff]  ;;  %v303_v41 = vld [vmem:[#allocation2 + $0xa8] sm:$0xff]  ;;  %v304_v43 = vld [vmem:[#allocation2 + $0xb0] sm:$0xff]  ;;  %v5908_v34 = vmov 683565275   ;;  %s4001_s7 = sshll.u32 %s260_s17, 5 }
  0x51   : > { %s7247_s8 = smov (!%p264_p10, %s4002_s8), 7  ;;  %4410 = vmatprep.subr.mxu0 %v383_v3  ;;  %v490_v12 = vsub.f32 %v280_v0, %v383_v3  ;;  %v5082_v42 = vpack.c.bf16 %v303_v41, %v302_v40  ;;  %v305_v44 = vld [vmem:[#allocation2 + $0xb8] sm:$0xff]  ;;  %v306_v46 = vld [vmem:[#allocation2 + $0xc0] sm:$0xff]  ;;  %v307_v47 = vld [vmem:[#allocation2 + $0xc8] sm:$0xff]  ;;  %v5910_v41 = vmov 2131351028  }
  0x52   : > { %s4003_s30 = sshll.u32 %s7247_s8, 3  ;;  %4411 = vmatpush3.msra.mxu0 %v383_v3  ;;  %5075 = vmatprep.subr.bf16.mxu1 %v5074_v36  ;;  %v5086_v45 = vpack.c.bf16 %v305_v44, %v304_v43  ;;  %v5090_v48 = vpack.c.bf16 %v307_v47, %v306_v46  ;;  %v308_v49 = vld [vmem:[#allocation2 + $0xd0] sm:$0xff]  ;;  %v309_v50 = vld [vmem:[#allocation2 + $0xd8] sm:$0xff]  ;;  %v310_v52 = vld [vmem:[#allocation2 + $0xe0] sm:$0xff]  ;;  %v5911_v43 = vmov 2102212464  }
  0x53   : > { %s267_s6 = scalar_lea.vmem %s7184_s0, %s4003_s30  ;;  %v491_v17 = vand.u32 4294901760, %v490_v12  ;;  %5077 = vmatpush3.bf16.msra.mxu1 %v5074_v36  ;;  %v5094_v51 = vpack.c.bf16 %v309_v50, %v308_v49  ;;  %v311_v53 = vld [vmem:[#allocation2 + $0xe8] sm:$0xff]  ;;  %v312_v54 = vld [vmem:[#allocation2 + $0xf0] sm:$0xff]  ;;  %v313_v56 = vld [vmem:[#allocation2 + $0xf8] sm:$0xff]  ;;  %s273_s16 = scalar_lea.vmem %s7185_s1, %s4003_s30 }
  0x54   : > { %v6079_v1 = vld [vmem:[%s267_s6] sm:$0xff]  ;;  %v6081_v2 = vld [vmem:[%s267_s6 + $0x8] sm:$0xff]  ;;  %v6087_v6 = vld [vmem:[%s267_s6 + $0x10] sm:$0xff]  ;;  %5079 = vmatprep.subr.bf16.mxu1 %v5078_v39  ;;  %v5098_v55 = vpack.c.bf16 %v311_v53, %v310_v52  ;;  %v5102_v57 = vpack.c.bf16 %v313_v56, %v312_v54  ;;  %v5913_v52 = vmov 1326507024   ;;  %s262_s23 = scalar_lea.vmem [#allocation7], %s4001_s7 }
  0x55   : > { %v371_v4 = vsel %vm369_vm0, %v6079_v1, 0  ;;  %v374_v5 = vsel %vm369_vm0, %v6081_v2, 0  ;;  %v6089_v7 = vld [vmem:[%s267_s6 + $0x18] sm:$0xff]  ;;  %v377_v10 = vsel %vm369_vm0, %v6087_v6, 0  ;;  %v492_v22 = vsub.f32 %v490_v12, %v491_v17  ;;  %v282_v58 = vld [vmem:[#allocation2] sm:$0xff]  ;;  %v281_v38 = vld [vmem:[%s7187_s3 + $0x8] sm:$0xff] }
  0x56   : > { %v448_v8 = vand.u32 4294901760, %v371_v4  ;;  %v458_v9 = vand.u32 4294901760, %v374_v5  ;;  %v380_v11 = vsel %vm369_vm0, %v6089_v7, 0  ;;  %v468_v13 = vand.u32 4294901760, %v377_v10  ;;  %v283_v59 = vld [vmem:[#allocation2 + $0x8] sm:$0xff]  ;;  %s3897_s25 = sshll.u32 %s262_s23, 4  ;;  %s7136_s25 = int_to_ptr.vmem [resolvable:$true] %s3897_s25 }
  0x57   : > { %v478_v14 = vand.u32 4294901760, %v380_v11  ;;  %v493_v27 = vand.u32 4294901760, %v492_v22  ;;  %5081 = vmatpush3.bf16.msra.mxu1 %v5078_v39  ;;  %v6097_v60 = vpack.c.bf16 %v283_v59, %v282_v58  ;;  %v5909_v39 = vmov 2475754826   ;;  %s4054_s8 = sshll.u32 %s5968_s22, 9  ;;  %s7143_s6 = scalar_lea.sflag [#allocation4], %s260_s17 }
  0x58   : > { %v449_v15 = vsub.f32 %v371_v4, %v448_v8  ;;  %v459_v16 = vsub.f32 %v374_v5, %v458_v9  ;;  %v469_v18 = vsub.f32 %v377_v10, %v468_v13  ;;  %5083 = vmatprep.subr.bf16.mxu1 %v5082_v42  ;;  %s7141_s26 = scalar_lea.hbm %s7189_s5, %s4054_s8  ;;  %s5832_s22 = scalar_lea.vmem %s7136_s25, 512 }
  0x59   : > { %v479_v19 = vsub.f32 %v380_v11, %v478_v14  ;;  %4418 = vmatprep.subr.mxu0 %v493_v27  ;;  %p5833_p12 = scmp.ne.s32.totalorder %s7136_s25, %s5832_s22  ;;  %p7240_p1 = scmp.ne.s32.totalorder %s7209_s28, 0 }
  0x5a   : > { %v450_v20 = vand.u32 4294901760, %v449_v15  ;;  %v460_v21 = vand.u32 4294901760, %v459_v16  ;;  %v470_v23 = vand.u32 4294901760, %v469_v18  ;;  %s5914_s9 = smov [#allocation7]  }
  0x5b   : > { %v480_v24 = vand.u32 4294901760, %v479_v19  ;;  %5085 = vmatpush3.bf16.msra.mxu1 %v5082_v42  ;;  %p5834_p2 = pnand %p5833_p12, %p7240_p1  ;;  %s5836_s11 = sshll.u32 %s5914_s9, 4  ;;  %s5837_s11 = int_to_ptr.vmem [resolvable:$false] %s5836_s11 }
  0x5c   : > { %v451_v25 = vsub.f32 %v449_v15, %v450_v20  ;;  %v461_v26 = vsub.f32 %v459_v16, %v460_v21  ;;  %v471_v28 = vsub.f32 %v469_v18, %v470_v23  ;;  %5087 = vmatprep.subr.bf16.mxu1 %v5086_v45  ;;  %s5838_s12 = scalar_lea.vmem %s5837_s11, 1024  ;;  %p5839_p4 = scmp.lt.s32.totalorder %s7136_s25, %s5837_s11 }
  0x5d   : > { %v481_v29 = vsub.f32 %v479_v19, %v480_v24  ;;  %p5835_p3 = pneg %p5834_p2  ;;  %p5840_p7 = scmp.lt.s32.totalorder %s5838_s12, %s5832_s22 }
  0x5e   : > { %v452_v30 = vand.u32 4294901760, %v451_v25  ;;  %v462_v31 = vand.u32 4294901760, %v461_v26  ;;  %v472_v32 = vand.u32 4294901760, %v471_v28 }
  0x5f   : > { %v482_v33 = vand.u32 4294901760, %v481_v29  ;;  %5089 = vmatpush3.bf16.msra.mxu1 %v5086_v45  ;;  %v5912_v45 = vmov 920167782   ;;  %p5841_p8 = por %p5840_p7, %p5839_p4 }
  0x60   : > { %4412 = vmatprep.mubr.f32.mxu0 %v452_v30  ;;  %5091 = vmatprep.subr.bf16.mxu1 %v5090_v48 }
  0x61   : > { %4413 = vmatmul.mubr.f32.vlgmr.msra.gmra.mrb[0].mxu0 %v462_v31  ;;  %p5842_p11 = pnand %p5841_p8, %p5835_p3 }
  0x62   : > { %4419 = vmatpush3.msra.mxu0 %v493_v27  ;;  %4415 = vmatprep.mubr.f32.mxu0 %v472_v32 }
  0x63   : > { %4426 = vmatprep.subr.mxu0 %v490_v12  ;;  %5093 = vmatpush3.bf16.msra.mxu1 %v5090_v48 }
  0x64   : > { %5095 = vmatprep.subr.bf16.mxu1 %v5094_v51 }
  0x65   : > { %4416 = vmatmul.mubr.f32.gmra.mrb[2].mxu0 %v482_v33 }
  0x66   : > { %4420 = vmatprep.mubr.f32.mxu0 %v448_v8 }
  0x67   : > { %5097 = vmatpush3.bf16.msra.mxu1 %v5094_v51 }
  0x68   : > { %5099 = vmatprep.subr.bf16.mxu1 %v5098_v55 }
  0x69   : > { %4421 = vmatmul.mubr.f32.vlgmr.msra.gmra.mrb[0].mxu0 %v458_v9 }
  0x6a   : > { %4427 = vmatpush3.msra.mxu0 %v490_v12  ;;  %4423 = vmatprep.mubr.f32.mxu0 %v468_v13 }
  0x6b   : > { %4434 = vmatprep.subr.mxu0 %v383_v3  ;;  %5101 = vmatpush3.bf16.msra.mxu1 %v5098_v55 }
  0x6c   : > { %5103 = vmatprep.subr.bf16.mxu1 %v5102_v57 }
  0x6d   : > { %4424 = vmatmul.mubr.f32.gmra.mrb[2].mxu0 %v478_v14 }
  0x6e   : > { %4428 = vmatprep.mubr.f32.mxu0 %v449_v15 }
  0x6f   : > { %5105 = vmatpush3.bf16.msra.mxu1 %v5102_v57 }
  0x70   : > { %5107 = vmatprep.subr.bf16.mxu1 %v6097_v60 }
  0x71   : > { %4429 = vmatmul.mubr.f32.vlgmr.msra.gmra.mrb[0].mxu0 %v459_v16 }
  0x72   : > { %4435 = vmatpush3.msra.mxu0 %v383_v3  ;;  %4431 = vmatprep.mubr.f32.mxu0 %v469_v18 }
  0x73   : > { %4442 = vmatprep.subr.mxu0 %v491_v17 }
  0x75   : > { %4432 = vmatmul.mubr.f32.gmra.mrb[2].mxu0 %v479_v19 }
  0x76   : > { %4436 = vmatprep.mubr.f32.mxu0 %v450_v20 }
  0x79   : > { %4437 = vmatmul.mubr.f32.vlgmr.msra.gmra.mrb[0].mxu0 %v460_v21 }
  0x7a   : > { %4443 = vmatpush3.msra.mxu0 %v491_v17  ;;  %4439 = vmatprep.mubr.f32.mxu0 %v470_v23 }
  0x7b   : > { %4450 = vmatprep.subr.mxu0 %v383_v3 }
  0x7d   : > { %4440 = vmatmul.mubr.f32.gmra.mrb[2].mxu0 %v480_v24 }
  0x7e   : > { %4444 = vmatprep.mubr.f32.mxu0 %v448_v8 }
  0x81   : > { %4445 = vmatmul.mubr.f32.vlgmr.msra.gmra.mrb[0].mxu0 %v458_v9 }
  0x82   : > { %4451 = vmatpush3.msra.mxu0 %v383_v3  ;;  %4447 = vmatprep.mubr.f32.mxu0 %v468_v13 }
  0x83   : > { %4534 = vmatprep.subr.mxu0 %v281_v38 }
  0x85   : > { %4448 = vmatmul.mubr.f32.gmra.mrb[2].mxu0 %v478_v14 }
  0x86   : > { %4452 = vmatprep.mubr.f32.mxu0 %v448_v8 }
  0x89   : > { %4453 = vmatmul.mubr.f32.vlgmr.msra.gmra.mrb[0].mxu0 %v458_v9 }
  0x8a   : > { %4455 = vmatprep.mubr.f32.mxu0 %v468_v13  ;;  %4535 = vmatpush3.msra.mxu0 %v281_v38 }
  0x8d   : > { %4456 = vmatmul.mubr.f32.gmra.mrb[2].mxu0 %v478_v14 }
  0x8e   : > { %4536 = vmatprep.mubr.msk.f32.mxu0 %vm369_vm0, %v6079_v1 }
  0x91   : > { %4537 = vmatmul.mubr.msk.f32.vlgmr.msra.gmra.mrb[4].mxu0 %vm369_vm0, %v6081_v2 }
  0x92   : > { %4539 = vmatprep.mubr.msk.f32.mxu0 %vm369_vm0, %v6087_v6 }
  0x95   : > { %4540 = vmatmul.mubr.msk.f32.gmra.mrb[6].mxu0 %vm369_vm0, %v6089_v7 }
 0x15c   : > { %v6099_v61 = vpop.f32.mrb[0].mxu0 }
 0x15d   : > { %v1060_v62 = vand.u32 2147483647, %v6099_v61  ;;  %v1063_v63 = vand.u32 2139095040, %v6099_v61  ;;  %v6103_v0 = vpop.f32.mrb[1].mxu0 }
 0x15e   : > { %v957_v1 = vand.u32 2147483647, %v6103_v0  ;;  %v960_v3 = vand.u32 2139095040, %v6103_v0 }
 0x15f   : > { %v1064_v4 = vshrl.u32 %v1063_v63, 23  ;;  %v1067_v5 = vand.u32 8388607, %v1060_v62 }
 0x160   : > { %v961_v8 = vshrl.u32 %v960_v3, 23  ;;  %v964_v9 = vand.u32 8388607, %v957_v1  ;;  %v6112_v10 = vpop.f32.mrb[2].mxu0 }
 0x161   : > { %v4010_v11 = vadd.s32 4294967169, %v1064_v4  ;;  %v1266_v12 = vand.u32 2147483647, %v6112_v10  ;;  %v6115_v13 = vpop.f32.mrb[3].mxu0  ;;  %v1269_v15 = vand.u32 2139095040, %v6112_v10  ;;  %v1068_v16 = vor.u32 8388608, %v1067_v5 }
 0x162   : > { %v4006_v14 = vadd.s32 4294967169, %v961_v8  ;;  %v965_v18 = vor.u32 8388608, %v964_v9  ;;  %v1163_v24 = vand.u32 2147483647, %v6115_v13  ;;  %v1166_v32 = vand.u32 2139095040, %v6115_v13 }
 0x163   : > { %v1070_v17 = vadd.s32 1, %v4010_v11  ;;  %v1270_v20 = vshrl.u32 %v1269_v15, 23  ;;  %v6120_v21 = vand.u32 8388607, %v1266_v12  ;;  %v6123_v27 = vshll.u32 %v1068_v16, 8 }
 0x164   : > { %v967_v19 = vadd.s32 1, %v4006_v14  ;;  %v6127_v30 = vshll.u32 %v965_v18, 8 }
 0x165   : > { %vm1071_vm1 = vcmp.gt.s32.totalorder %v1070_v17, 0  ;;  %v4018_v23 = vadd.s32 4294967169, %v1270_v20  ;;  %v1274_v31 = vor.u32 8388608, %v6120_v21 }
 0x166   : > { %v1072_v22 = vsel %vm1071_vm1, %v1070_v17, 0  ;;  %vm968_vm2 = vcmp.gt.s32.totalorder %v967_v19, 0 }
 0x167   : > { %v1073_v25 = vshrl.u32 %v1072_v22, 5  ;;  %v1074_v26 = vand.u32 31, %v1072_v22  ;;  %v969_v28 = vsel %vm968_vm2, %v967_v19, 0  ;;  %v6134_v37 = vadd.s32 1, %v4018_v23 }
 0x168   : > { %v6125_v29 = vshrl.u32 %v969_v28, 5  ;;  %v6132_v36 = vand.u32 31, %v969_v28 }
 0x169   : > { %v1075_v33 = vsub.s32 32, %v1074_v26  ;;  %v1077_v35 = vshll.u32 %v5908_v34, %v1074_v26  ;;  %v1080_v40 = vshll.u32 %v5909_v39, %v1074_v26  ;;  %v1083_v42 = vshll.u32 %v5910_v41, %v1074_v26 }
 0x16a   : > { %v1086_v44 = vshll.u32 %v5911_v43, %v1074_v26  ;;  %v1089_v46 = vshll.u32 %v5912_v45, %v1074_v26  ;;  %vm1092_vm3 = vcmp.lt.s32.totalorder %v1073_v25, 1  ;;  %vm1093_vm4 = vcmp.lt.s32.totalorder %v1073_v25, 2 }
 0x16b   : > { %v1078_v47 = vshrl.u32 %v5909_v39, %v1075_v33  ;;  %v1081_v48 = vshrl.u32 %v5910_v41, %v1075_v33  ;;  %v1084_v49 = vshrl.u32 %v5911_v43, %v1075_v33  ;;  %v1076_v50 = vshrl.u32 %v5908_v34, %v1075_v33 }
 0x16c   : > { %v1087_v51 = vshrl.u32 %v5912_v45, %v1075_v33  ;;  %v1090_v53 = vshrl.u32 %v5913_v52, %v1075_v33  ;;  %v972_v57 = vsub.s32 32, %v6132_v36  ;;  %vm1094_vm5 = vcmp.lt.s32.totalorder %v1073_v25, 3 }
 0x16d   : > { %v1079_v54 = vor.u32 %v1078_v47, %v1077_v35  ;;  %v1082_v55 = vor.u32 %v1081_v48, %v1080_v40  ;;  %v1085_v56 = vor.u32 %v1084_v49, %v1083_v42  ;;  %vm1095_vm6 = vcmp.lt.s32.totalorder %v1073_v25, 4 }
 0x16e   : > { %v1088_v58 = vor.u32 %v1087_v51, %v1086_v44  ;;  %v1091_v59 = vor.u32 %v1090_v53, %v1089_v46  ;;  %v974_v11 = vshll.u32 %v5908_v34, %v6132_v36  ;;  %v975_v15 = vshrl.u32 %v5909_v39, %v972_v57 }
 0x16f   : > { %v1096_v63 = vsel %vm1092_vm3, %v1076_v50, %v1079_v54  ;;  %v1097_v3 = vsel %vm1095_vm6, %v1085_v56, 2102212464  ;;  %v1100_v4 = vsel %vm1092_vm3, %v1079_v54, %v1082_v55  ;;  %v1104_v5 = vsel %vm1092_vm3, %v1082_v55, %v1085_v56 }
 0x170   : > { %v1098_v2 = vsel %vm1094_vm5, %v1082_v55, %v1097_v3  ;;  %v1101_v8 = vsel %vm1095_vm6, %v1088_v58, 920167782  ;;  %v1105_v9 = vsel %vm1095_vm6, %v1091_v59, 1326507024  ;;  %v977_v16 = vshll.u32 %v5909_v39, %v6132_v36 }
 0x171   : > { %v1102_v6 = vsel %vm1094_vm5, %v1085_v56, %v1101_v8  ;;  %v1106_v14 = vsel %vm1094_vm5, %v1088_v58, %v1105_v9  ;;  %v1099_v17 = vsel %vm1093_vm4, %v1096_v63, %v1098_v2  ;;  %v978_v20 = vshrl.u32 %v5910_v41, %v972_v57 }
 0x172   : > { %v1103_v18 = vsel %vm1093_vm4, %v1100_v4, %v1102_v6  ;;  %v1107_v19 = vsel %vm1093_vm4, %v1104_v5, %v1106_v14  ;;  %v976_v28 = vor.u32 %v975_v15, %v974_v11  ;;  %v980_v35 = vshll.u32 %v5910_v41, %v6132_v36 }
 0x173   : > { %v6169_v22 = vmul.u32.u64.low %v6123_v27, %v1107_v19  ;;  %v6170_v23 = vmul.u32.u64.high %v6123_v27, %v1107_v19, %v6169_v22  ;;  %v6173_v7 = vmul.u32.u64.low %v6123_v27, %v1103_v18  ;;  %v6174_v26 = vmul.u32.u64.high %v6123_v27, %v1103_v18, %v6173_v7 }
 0x174   : > { %v979_v33 = vor.u32 %v978_v20, %v977_v16  ;;  %v981_v38 = vshrl.u32 %v5911_v43, %v972_v57  ;;  %v973_v25 = vshrl.u32 %v5908_v34, %v972_v57  ;;  %v983_v40 = vshll.u32 %v5911_v43, %v6132_v36 }
 0x175   : > { %v984_v42 = vshrl.u32 %v5912_v45, %v972_v57  ;;  %v987_v44 = vshrl.u32 %v5913_v52, %v972_v57  ;;  %v1115_v46 = vmul.u32 %v6123_v27, %v1099_v17  ;;  %v986_v48 = vshll.u32 %v5912_v45, %v6132_v36 }
 0x176   : > { %v982_v47 = vor.u32 %v981_v38, %v980_v35  ;;  %vm989_vm7 = vcmp.lt.s32.totalorder %v6125_v29, 1  ;;  %vm1117_vm8 = vc.u32 %v6170_v23, %v6173_v7  ;;  %v1118_v49 = vadd.s32 1, %v6174_v26 }
 0x177   : > { %v985_v50 = vor.u32 %v984_v42, %v983_v40  ;;  %vm990_vm9 = vcmp.lt.s32.totalorder %v6125_v29, 2  ;;  %v988_v51 = vor.u32 %v987_v44, %v986_v48  ;;  %vm991_vm10 = vcmp.lt.s32.totalorder %v6125_v29, 3 }
 0x178   : > { %vm992_vm11 = vcmp.lt.s32.totalorder %v6125_v29, 4  ;;  %v997_v27 = vsel %vm989_vm7, %v976_v28, %v979_v33  ;;  %v1119_v53 = vsel %vm1117_vm8, %v1118_v49, %v6174_v26  ;;  %v1001_v55 = vsel %vm989_vm7, %v979_v33, %v982_v47 }
 0x179   : > { %v994_v54 = vsel %vm992_vm11, %v982_v47, 2102212464  ;;  %v998_v36 = vsel %vm992_vm11, %v985_v50, 920167782  ;;  %v1120_v56 = vadd.s32 %v1119_v53, %v1115_v46  ;;  %v993_v57 = vsel %vm989_vm7, %v973_v25, %v976_v28 }
 0x17a   : > { %v999_v58 = vsel %vm991_vm10, %v982_v47, %v998_v36  ;;  %v1002_v59 = vsel %vm992_vm11, %v988_v51, 1326507024  ;;  %v995_v63 = vsel %vm991_vm10, %v979_v33, %v994_v54  ;;  %vm1277_vm12 = vcmp.gt.s32.totalorder %v6134_v37, 0 }
 0x17b   : > { %v1000_v3 = vsel %vm990_vm9, %v997_v27, %v999_v58  ;;  %v1003_v4 = vsel %vm991_vm10, %v985_v50, %v1002_v59  ;;  %v1121_v5 = vadd.s32 536870912, %v1120_v56  ;;  %v1278_v14 = vsel %vm1277_vm12, %v6134_v37, 0 }
 0x17c   : > { %v1004_v2 = vsel %vm990_vm9, %v1001_v55, %v1003_v4  ;;  %v6202_v8 = vmul.u32.u64.low %v6127_v30, %v1000_v3  ;;  %v6203_v9 = vmul.u32.u64.high %v6127_v30, %v1000_v3, %v6202_v8  ;;  %v1167_v15 = vshrl.u32 %v1166_v32, 23 }
 0x17d   : > { %v6207_v11 = vmul.u32.u64.low %v6127_v30, %v1004_v2  ;;  %v6208_v6 = vmul.u32.u64.high %v6127_v30, %v1004_v2, %v6207_v11  ;;  %v6213_v16 = vshrl.u32 %v1121_v5, 30  ;;  %v996_v17 = vsel %vm990_vm9, %v993_v57, %v995_v63 }
 0x17e   : > { %v1280_v18 = vand.u32 31, %v1278_v14  ;;  %v6219_v19 = vand.u32 8388607, %v1163_v24  ;;  %v1015_v22 = vadd.s32 1, %v6203_v9  ;;  %v6225_v37 = vshll.u32 %v1274_v31, 8 }
 0x17f   : > { %v1123_v20 = vshll.u32 %v6213_v16, 30  ;;  %v1012_v32 = vmul.u32 %v6127_v30, %v996_v17  ;;  %vm1014_vm13 = vc.u32 %v6208_v6, %v6202_v8  ;;  %v1279_v29 = vshrl.u32 %v1278_v14, 5 }
 0x180   : > { %v1281_v26 = vsub.s32 32, %v1280_v18  ;;  %v4014_v28 = vadd.s32 4294967169, %v1167_v15  ;;  %v1016_v35 = vsel %vm1014_vm13, %v1015_v22, %v6203_v9  ;;  %v1283_v38 = vshll.u32 %v5908_v34, %v1280_v18 }
 0x181   : > { %v6230_v33 = vsub.s32 %v1120_v56, %v1123_v20  ;;  %v1286_v25 = vshll.u32 %v5909_v39, %v1280_v18  ;;  %v1017_v40 = vadd.s32 %v1016_v35, %v1012_v32  ;;  %v1289_v30 = vshll.u32 %v5910_v41, %v1280_v18 }
 0x182   : > { %v1284_v21 = vshrl.u32 %v5909_v39, %v1281_v26  ;;  %v1287_v31 = vshrl.u32 %v5910_v41, %v1281_v26  ;;  %v1290_v44 = vshrl.u32 %v5911_v43, %v1281_v26  ;;  %v1292_v46 = vshll.u32 %v5911_v43, %v1280_v18 }
 0x183   : > { %v1126_v42 = vsub.s32 0, %v6230_v33  ;;  %v1293_v47 = vshrl.u32 %v5912_v45, %v1281_v26  ;;  %v1018_v48 = vadd.s32 536870912, %v1017_v40  ;;  %v1295_v51 = vshll.u32 %v5912_v45, %v1280_v18 }
 0x184   : > { %v1285_v49 = vor.u32 %v1284_v21, %v1283_v38  ;;  %v1288_v50 = vor.u32 %v1287_v31, %v1286_v25  ;;  %v1291_v53 = vor.u32 %v1290_v44, %v1289_v30  ;;  %v1296_v36 = vshrl.u32 %v5913_v52, %v1281_v26 }
 0x185   : > { %v4011_v27 = vmin.u32 %v1126_v42, %v6230_v33  ;;  %v1294_v54 = vor.u32 %v1293_v47, %v1292_v46  ;;  %v6245_v55 = vshrl.u32 %v1018_v48, 30  ;;  %v1282_v56 = vshrl.u32 %v5908_v34, %v1281_v26 }
 0x186   : > { %vm1298_vm14 = vcmp.lt.s32.totalorder %v1279_v29, 1  ;;  %vm1299_vm15 = vcmp.lt.s32.totalorder %v1279_v29, 2  ;;  %v1297_v58 = vor.u32 %v1296_v36, %v1295_v51  ;;  %vm1300_vm0 = vcmp.lt.s32.totalorder %v1279_v29, 3 }
 0x187   : > { %v1128_v57 = vclz %v4011_v27  ;;  %vm1301_vm1 = vcmp.lt.s32.totalorder %v1279_v29, 4  ;;  %v1020_v59 = vshll.u32 %v6245_v55, 30  ;;  %v1306_v3 = vsel %vm1298_vm14, %v1285_v49, %v1288_v50 }
 0x188   : > { %v1303_v63 = vsel %vm1301_vm1, %v1291_v53, 2102212464  ;;  %v1307_v4 = vsel %vm1301_vm1, %v1294_v54, 920167782  ;;  %v1302_v2 = vsel %vm1298_vm14, %v1282_v56, %v1285_v49  ;;  %v1310_v11 = vsel %vm1298_vm14, %v1288_v50, %v1291_v53 }
 0x189   : > { %v4012_v5 = vadd.s32 4294967294, %v1128_v57  ;;  %v1308_v9 = vsel %vm1300_vm0, %v1291_v53, %v1307_v4  ;;  %v6249_v14 = vsub.s32 %v1017_v40, %v1020_v59  ;;  %v1304_v15 = vsel %vm1300_vm0, %v1288_v50, %v1303_v63 }
 0x18a   : > { %v1309_v17 = vsel %vm1299_vm15, %v1306_v3, %v1308_v9  ;;  %v1311_v18 = vsel %vm1301_vm1, %v1297_v58, 1326507024  ;;  %v1116_v32 = vadd.s32 %v6173_v7, %v6170_v23  ;;  %v1305_v31 = vsel %vm1299_vm15, %v1302_v2, %v1304_v15 }
 0x18b   : > { %vm4013_vm2 = vcmp.lt.s32.totalorder %v4012_v5, 0  ;;  %v1312_v20 = vsel %vm1300_vm0, %v1294_v54, %v1311_v18  ;;  %v6253_v22 = vmul.u32.u64.low %v6225_v37, %v1309_v17  ;;  %v6254_v26 = vmul.u32.u64.high %v6225_v37, %v1309_v17, %v6253_v22 }
 0x18c   : > { %v1131_v35 = vsel %vm4013_vm2, 0, %v4012_v5  ;;  %v1023_v38 = vsub.s32 0, %v6249_v14  ;;  %v1313_v25 = vsel %vm1299_vm15, %v1310_v11, %v1312_v20  ;;  %v1173_v30 = vadd.s32 1, %v4014_v28 }
 0x18d   : > { %v1132_v40 = vsub.s32 32, %v1131_v35  ;;  %v1136_v21 = vsub.s32 4294967266, %v1131_v35  ;;  %v1133_v42 = vshll.u32 %v6230_v33, %v1131_v35  ;;  %v1324_v7 = vadd.s32 1, %v6254_v26 }
 0x18e   : > { %v4007_v44 = vmin.u32 %v1023_v38, %v6249_v14  ;;  %v6265_v46 = vmul.u32.u64.low %v6225_v37, %v1313_v25  ;;  %v6266_v47 = vmul.u32.u64.high %v6225_v37, %v1313_v25, %v6265_v46  ;;  %vm1174_vm3 = vcmp.gt.s32.totalorder %v1173_v30, 0 }
 0x18f   : > { %v1134_v48 = vshrl.u32 %v1116_v32, %v1132_v40  ;;  %v1137_v23 = vadd.s32 127, %v1136_v21  ;;  %v1146_v49 = vsub.s32 4, %v6213_v16  ;;  %v1175_v51 = vsel %vm1174_vm3, %v1173_v30, 0 }
 0x190   : > { %v1025_v50 = vclz %v4007_v44  ;;  %v1177_v28 = vand.u32 31, %v1175_v51  ;;  %vm1062_vm4 = vcmp.lt.s32.totalorder %v6099_v61, 0  ;;  %v1321_v53 = vmul.u32 %v6225_v37, %v1305_v31 }
 0x191   : > { %v1135_v29 = vor.u32 %v1134_v48, %v1133_v42  ;;  %v1138_v27 = vshll.u32 %v1137_v23, 23  ;;  %vm1323_vm5 = vc.u32 %v6266_v47, %v6253_v22  ;;  %vm6276_vm6 = vcmp.le.f32.partialorder %v1060_v62, 0.7853982 }
 0x192   : > { %v4008_v33 = vadd.s32 4294967294, %v1025_v50  ;;  %v1325_v56 = vsel %vm1323_vm5, %v1324_v7, %v6254_v26  ;;  %v1171_v57 = vor.u32 8388608, %v6219_v19  ;;  %v1178_v58 = vsub.s32 32, %v1177_v28 }
 0x193   : > { %v1139_v36 = vor.u32 4788187, %v1138_v27  ;;  %v6285_v59 = vsel %vm1062_vm4, %v1146_v49, %v6213_v16  ;;  %v1013_v37 = vadd.s32 %v6202_v8, %v6208_v6  ;;  %v1326_v63 = vadd.s32 %v1325_v56, %v1321_v53 }
 0x194   : > { %vm4009_vm7 = vcmp.lt.s32.totalorder %v4008_v33, 0  ;;  %v1142_v3 = vcvt.s32.f32 %v1135_v29  ;;  %v1043_v5 = vsub.s32 4, %v6245_v55  ;;  %v6290_v15 = vshrl.u32 %v1175_v51, 5 }
 0x195   : > { %v1140_v62 = vand.u32 2147483647, %v1139_v36  ;;  %v1028_v4 = vsel %vm4009_vm7, 0, %v4008_v33  ;;  %v1327_v11 = vadd.s32 536870912, %v1326_v63  ;;  %v1180_v16 = vshll.u32 %v5908_v34, %v1177_v28 }
 0x196   : > { %v1029_v2 = vsub.s32 32, %v1028_v4  ;;  %v1033_v9 = vsub.s32 4294967266, %v1028_v4  ;;  %v1030_v18 = vshll.u32 %v6249_v14, %v1028_v4  ;;  %v1181_v20 = vshrl.u32 %v5909_v39, %v1178_v58 }
 0x197   : > { %v1143_v17 = vmul.f32 %v1142_v3, %v1140_v62  ;;  %v6295_v26 = vshrl.u32 %v1327_v11, 30  ;;  %v1184_v32 = vshrl.u32 %v5910_v41, %v1178_v58  ;;  %v1183_v38 = vshll.u32 %v5909_v39, %v1177_v28 }
 0x198   : > { %v1031_v8 = vshrl.u32 %v1013_v37, %v1029_v2  ;;  %v1034_v6 = vadd.s32 127, %v1033_v9  ;;  %v1187_v25 = vshrl.u32 %v5911_v43, %v1178_v58  ;;  %v1190_v40 = vshrl.u32 %v5912_v45, %v1178_v58 }
 0x199   : > { %v1144_v35 = vxor.u32 2147483648, %v1143_v17  ;;  %vm959_vm8 = vcmp.lt.s32.totalorder %v6103_v0, 0  ;;  %v1329_v31 = vshll.u32 %v6295_v26, 30  ;;  %v1179_v30 = vshrl.u32 %v5908_v34, %v1178_v58 }
 0x19a   : > { %v1032_v14 = vor.u32 %v1031_v8, %v1030_v18  ;;  %v1035_v21 = vshll.u32 %v1034_v6, 23  ;;  %v1182_v44 = vor.u32 %v1181_v20, %v1180_v16  ;;  %v1186_v46 = vshll.u32 %v5910_v41, %v1177_v28 }
 0x19b   : > { %v1145_v42 = vsel %vm1062_vm4, %v1144_v35, %v1143_v17  ;;  %v1189_v39 = vshll.u32 %v5911_v43, %v1177_v28  ;;  %vm6313_vm9 = vcmp.le.f32.partialorder %v957_v1, 0.7853982  ;;  %v6317_v34 = vsub.s32 %v1326_v63, %v1329_v31 }
 0x19c   : > { %v1148_v48 = vsel %vm6276_vm6, %v6099_v61, %v1145_v42  ;;  %v1036_v7 = vor.u32 4788187, %v1035_v21  ;;  %v1185_v49 = vor.u32 %v1184_v32, %v1183_v38  ;;  %v1188_v50 = vor.u32 %v1187_v25, %v1186_v46 }
 0x19d   : > { %v1191_v51 = vor.u32 %v1190_v40, %v1189_v39  ;;  %v1192_v41 = vshll.u32 %v5912_v45, %v1177_v28  ;;  %v1193_v43 = vshrl.u32 %v5913_v52, %v1178_v58  ;;  %5744 = vcosq.f32 %v1148_v48 }
 0x19e   : > { %v1037_v29 = vand.u32 2147483647, %v1036_v7  ;;  %v1039_v27 = vcvt.s32.f32 %v1032_v14  ;;  %v1332_v33 = vsub.s32 0, %v6317_v34  ;;  %5746 = vsinq.f32 %v1148_v48 }
 0x19f   : > { %v1194_v1 = vor.u32 %v1193_v43, %v1192_v41  ;;  %vm1195_vm10 = vcmp.lt.s32.totalorder %v6290_v15, 1  ;;  %vm1196_vm11 = vcmp.lt.s32.totalorder %v6290_v15, 2  ;;  %vm1198_vm12 = vcmp.lt.s32.totalorder %v6290_v15, 4 }
 0x1a0   : > { %v1040_v53 = vmul.f32 %v1039_v27, %v1037_v29  ;;  %v4019_v36 = vmin.u32 %v1332_v33, %v6317_v34  ;;  %v1203_v45 = vsel %vm1195_vm10, %v1182_v44, %v1185_v49  ;;  %vm1197_vm13 = vcmp.lt.s32.totalorder %v6290_v15, 3 }
 0x1a1   : > { %v1204_v52 = vsel %vm1198_vm12, %v1191_v51, 920167782  ;;  %v1207_v28 = vsel %vm1195_vm10, %v1185_v49, %v1188_v50  ;;  %v1208_v56 = vsel %vm1198_vm12, %v1194_v1, 1326507024  ;;  %v1200_v63 = vsel %vm1198_vm12, %v1188_v50, 2102212464 }
 0x1a2   : > { %v1041_v58 = vxor.u32 2147483648, %v1040_v53  ;;  %v1334_v37 = vclz %v4019_v36  ;;  %v1205_v62 = vsel %vm1197_vm13, %v1188_v50, %v1204_v52  ;;  %v1209_v4 = vsel %vm1197_vm13, %v1191_v51, %v1208_v56  ;;  %v284_v52 = vld [vmem:[#allocation2 + $0x10] sm:$0xff] }
 0x1a3   : > { %v1206_v3 = vsel %vm1196_vm11, %v1203_v45, %v1205_v62  ;;  %v1211_v2 = vshll.u32 %v1171_v57, 8  ;;  %v1044_v9 = vsel %vm959_vm8, %v1043_v5, %v6245_v55  ;;  %v1199_v18 = vsel %vm1195_vm10, %v1179_v30, %v1182_v44 }
 0x1a4   : > { %v1042_v11 = vsel %vm959_vm8, %v1041_v58, %v1040_v53  ;;  %v4020_v17 = vadd.s32 4294967294, %v1334_v37  ;;  %v1210_v16 = vsel %vm1196_vm11, %v1207_v28, %v1209_v4  ;;  %v1201_v19 = vsel %vm1197_vm13, %v1185_v49, %v1200_v63  ;;  %v285_v28 = vld [vmem:[#allocation2 + $0x18] sm:$0xff] }
 0x1a5   : > { %v1045_v20 = vsel %vm6313_vm9, %v6103_v0, %v1042_v11  ;;  %v6353_v57 = vmul.u32.u64.low %v1211_v2, %v1210_v16  ;;  %v6354_v8 = vmul.u32.u64.high %v1211_v2, %v1210_v16, %v6353_v57  ;;  %v6362_v32 = vsel %vm6313_vm9, 0, %v1044_v9  ;;  %v286_v11 = vld [vmem:[#allocation2 + $0x20] sm:$0xff] }
 0x1a6   : > { %5748 = vcosq.f32 %v1045_v20  ;;  %vm4021_vm14 = vcmp.lt.s32.totalorder %v4020_v17, 0  ;;  %v6356_v55 = vmul.u32.u64.low %v1211_v2, %v1206_v3  ;;  %v6357_v5 = vmul.u32.u64.high %v1211_v2, %v1206_v3, %v6356_v55  ;;  %v6420_v57 = vld [vmem:[#allocation2 + $0x208] sm:$0xff] }
 0x1a7   : > { %5750 = vsinq.f32 %v1045_v20  ;;  %v1337_v6 = vsel %vm4021_vm14, 0, %v4020_v17  ;;  %v6364_v35 = vpop.eup %5744  ;;  %v1202_v25 = vsel %vm1196_vm11, %v1199_v18, %v1201_v19  ;;  %v6371_v40 = vsel %vm6276_vm6, 0, %v6285_v59  ;;  %v287_v17 = vld [vmem:[#allocation2 + $0x28] sm:$0xff]  ;;  %v6418_v19 = vld [vmem:[#allocation2 + $0x200] sm:$0xff] }
 0x1a8   : > { %v1342_v38 = vsub.s32 4294967266, %v1337_v6  ;;  %v6373_v14 = vpop.eup %5746  ;;  %vm1220_vm15 = vc.u32 %v6354_v8, %v6356_v55  ;;  %v1221_v21 = vadd.s32 1, %v6357_v5  ;;  %v1462_v31 = vadd.s32 3, %v6362_v32 }
 0x1a9   : > { %v1218_v42 = vmul.u32 %v1211_v2, %v1202_v25  ;;  %v1566_v44 = vadd.s32 3, %v6371_v40  ;;  %v1338_v15 = vsub.s32 32, %v1337_v6  ;;  %v1156_v54 = vxor.u32 2147483648, %v6373_v14  ;;  %v289_v25 = vld [vmem:[#allocation2 + $0x38] sm:$0xff] }
 0x1aa   : > { %v1343_v30 = vadd.s32 127, %v1342_v38  ;;  %v1222_v46 = vsel %vm1220_vm15, %v1221_v21, %v6357_v5  ;;  %v1159_v59 = vxor.u32 2147483648, %v6364_v35  ;;  %v1322_v23 = vadd.s32 %v6253_v22, %v6266_v47  ;;  %v288_v38 = vld [vmem:[#allocation2 + $0x30] sm:$0xff] }
 0x1ab   : > { %v1223_v39 = vadd.s32 %v1222_v46, %v1218_v42  ;;  %v1567_v48 = vand.u32 3, %v1566_v44  ;;  %v1463_v7 = vand.u32 3, %v1462_v31  ;;  %v1339_v47 = vshll.u32 %v6317_v34, %v1337_v6  ;;  %v6422_v21 = vld [vmem:[#allocation2 + $0x210] sm:$0xff]  ;;  %v6426_v44 = vld [vmem:[#allocation2 + $0x218] sm:$0xff] }
 0x1ac   : > { %v1344_v49 = vshll.u32 %v1343_v30, 23  ;;  %v1340_v41 = vshrl.u32 %v1322_v23, %v1338_v15  ;;  %vm1049_vm6 = vweird.f32 %v6103_v0  ;;  %vm1152_vm7 = vweird.f32 %v6099_v61  ;;  %v6430_v15 = vld [vmem:[#allocation2 + $0x228] sm:$0xff]  ;;  %v290_v23 = vld [vmem:[#allocation2 + $0x40] sm:$0xff]  ;;  %v6537_v61 = vpop.f32.mrb[4].mxu0 }
 0x1ad   : > { %v1224_v50 = vadd.s32 536870912, %v1223_v39  ;;  %vm1569_vm0 = vcmp.eq.s32.totalorder %v1567_v48, 0  ;;  %vm1572_vm1 = vcmp.eq.s32.totalorder %v1567_v48, 2  ;;  %vm1465_vm2 = vcmp.eq.s32.totalorder %v1463_v7, 0 }
 0x1ae   : > { %v1571_v33 = vsel %vm1569_vm0, %v6364_v35, %v1156_v54  ;;  %v1574_v22 = vsel %vm1572_vm1, %v1159_v59, %v6373_v14  ;;  %vm1468_vm3 = vcmp.eq.s32.totalorder %v1463_v7, 2  ;;  %v1345_v53 = vor.u32 4788187, %v1344_v49 }
 0x1af   : > { %v6389_v29 = vshrl.u32 %v1224_v50, 30  ;;  %vm1568_vm4 = vcmp.lt.s32.totalorder %v1567_v48, 2  ;;  %vm1464_vm5 = vcmp.lt.s32.totalorder %v1463_v7, 2  ;;  %v1341_v58 = vor.u32 %v1340_v41, %v1339_v47  ;;  %v291_v7 = vld [vmem:[#allocation2 + $0x48] sm:$0xff]  ;;  %v6439_v50 = vld [vmem:[#allocation2 + $0x230] sm:$0xff] }
 0x1b0   : > { %v6385_v51 = vpop.eup %5748  ;;  %v1575_v34 = vsel %vm1568_vm4, %v1571_v33, %v1574_v22  ;;  %v5110_v3 = vpack.c.bf16 %v285_v28, %v284_v52  ;;  %v1346_v4 = vand.u32 2147483647, %v1345_v53  ;;  %v5114_v20 = vpack.c.bf16 %v287_v17, %v286_v11  ;;  %v6444_v53 = vld [vmem:[#allocation2 + $0x238] sm:$0xff] }
 0x1b1   : > { %v6387_v43 = vpop.eup %5750  ;;  %v1056_v27 = vxor.u32 2147483648, %v6385_v51  ;;  %v1226_v36 = vshll.u32 %v6389_v29, 30  ;;  %v1576_v9 = vsel %vm1152_vm7, nan, %v1575_v34  ;;  %v1348_v18 = vcvt.s32.f32 %v1341_v58 }
 0x1b2   : > { %v1053_v1 = vxor.u32 2147483648, %v6387_v43  ;;  %v2053_v30 = vand.u32 4294901760, %v6418_v19  ;;  %v2056_v42 = vand.u32 4294901760, %v6420_v57  ;;  %v5118_v46 = vpack.c.bf16 %v289_v25, %v288_v38 }
 0x1b3   : > { %v1470_v45 = vsel %vm1468_vm3, %v1056_v27, %v6387_v43  ;;  %v6407_v37 = vsub.s32 %v1223_v39, %v1226_v36  ;;  %v1349_v5 = vmul.f32 %v1348_v18, %v1346_v4  ;;  %v2059_v39 = vand.u32 4294901760, %v6422_v21 }
 0x1b4   : > { %v1467_v56 = vsel %vm1465_vm2, %v6385_v51, %v1053_v1  ;;  %v6437_v49 = vpack.c.bf16 %v2056_v42, %v2053_v30  ;;  %v2062_v33 = vand.u32 4294901760, %v6426_v44  ;;  %v2068_v47 = vand.u32 4294901760, %v6430_v15 }
 0x1b5   : > { %v1471_v63 = vsel %vm1464_vm5, %v1467_v56, %v1470_v45  ;;  %v1229_v2 = vsub.s32 0, %v6407_v37  ;;  %v1350_v48 = vxor.u32 2147483648, %v1349_v5  ;;  %vm1268_vm9 = vcmp.lt.s32.totalorder %v6112_v10, 0 }
 0x1b6   : > { %v1472_v62 = vsel %vm1049_vm6, nan, %v1471_v63  ;;  %v1219_v36 = vadd.s32 %v6356_v55, %v6354_v8  ;;  %5139 = vmatprep.subr.bf16.mxu0 %v6437_v49  ;;  %v5122_v56 = vpack.c.bf16 %v291_v7, %v290_v23  ;;  %v6456_v34 = vpack.c.bf16 %v2062_v33, %v2059_v39  ;;  %v292_v63 = vld [vmem:[#allocation2 + $0x50] sm:$0xff]  ;;  %v297_v7 = vld [vmem:[#allocation2 + $0x78] sm:$0xff] }
 0x1b7   : > { %4490 = vmatprep.mubr.f32.mxu1 %v1472_v62  ;;  %v4015_v16 = vmin.u32 %v1229_v2, %v6407_v37  ;;  %5141 = vmatpush3.bf16.msra.mxu0 %v6437_v49  ;;  %v2071_v58 = vand.u32 4294901760, %v6439_v50  ;;  %v293_v62 = vld [vmem:[#allocation2 + $0x58] sm:$0xff]  ;;  %v1351_v4 = vsel %vm1268_vm9, %v1350_v48, %v1349_v5  ;;  %vm6471_vm10 = vcmp.le.f32.partialorder %v1266_v12, 0.7853982  ;;  %v295_v5 = vld [vmem:[#allocation2 + $0x68] sm:$0xff]  ;;  %v296_v23 = vld [vmem:[#allocation2 + $0x70] sm:$0xff] }
 0x1b8   : > { %4491 = vmatmul.mubr.f32.vlgmr.msra.gmra.mrb[0].mxu1 %v1576_v9  ;;  %5143 = vmatprep.subr.bf16.mxu0 %v6456_v34  ;;  %v5126_v17 = vpack.c.bf16 %v293_v62, %v292_v63  ;;  %v1354_v18 = vsel %vm6471_vm10, %v6112_v10, %v1351_v4  ;;  %v1249_v48 = vsub.s32 4, %v6389_v29  ;;  %vm1165_vm11 = vcmp.lt.s32.totalorder %v6115_v13, 0 }
 0x1b9   : > { %5109 = vmatpush3.bf16.msra.mxu1 %v6097_v60  ;;  %v1231_v6 = vclz %v4015_v16  ;;  %v6428_v60 = vld [vmem:[#allocation2 + $0x220] sm:$0xff]  ;;  %5752 = vcosq.f32 %v1354_v18  ;;  %vm1164_vm12 = vcmp.le.f32.partialorder %v1163_v24, 0.7853982  ;;  %v1153_v4 = vand.u32 3, %v6371_v40 }
 0x1ba   : > { %5111 = vmatprep.subr.bf16.mxu1 %v5110_v3  ;;  %v2065_v22 = vand.u32 4294901760, %v6428_v60  ;;  %5754 = vsinq.f32 %v1354_v18  ;;  %vm1255_vm15 = vweird.f32 %v6115_v13  ;;  %vm1358_vm0 = vweird.f32 %v6112_v10 }
 0x1bb   : > { %v4016_v31 = vadd.s32 4294967294, %v1231_v6  ;;  %5145 = vmatpush3.bf16.msra.mxu0 %v6456_v34  ;;  %v1352_v6 = vsub.s32 4, %v6295_v26  ;;  %vm1155_vm13 = vcmp.eq.s32.totalorder %v1153_v4, 0  ;;  %vm1158_vm14 = vcmp.eq.s32.totalorder %v1153_v4, 2 }
 0x1bc   : > { %v1157_v18 = vsel %vm1155_vm13, %v6364_v35, %v1156_v54  ;;  %v1160_v40 = vsel %vm1158_vm14, %v1159_v59, %v6373_v14  ;;  %vm1154_vm14 = vcmp.lt.s32.totalorder %v1153_v4, 2 }
 0x1bd   : > { %5113 = vmatpush3.bf16.msra.mxu1 %v5110_v3  ;;  %vm4017_vm8 = vcmp.lt.s32.totalorder %v4016_v31, 0  ;;  %v2074_v3 = vand.u32 4294901760, %v6444_v53 }
 0x1be   : > { %5115 = vmatprep.subr.bf16.mxu1 %v5114_v20  ;;  %v1234_v41 = vsel %vm4017_vm8, 0, %v4016_v31 }
 0x1bf   : > { %v1235_v45 = vsub.s32 32, %v1234_v41  ;;  %v1239_v52 = vsub.s32 4294967266, %v1234_v41  ;;  %v1236_v28 = vshll.u32 %v6407_v37, %v1234_v41  ;;  %v6463_v37 = vpack.c.bf16 %v2068_v47, %v2065_v22 }
 0x1c0   : > { %v6484_v12 = vpack.c.bf16 %v2074_v3, %v2071_v58  ;;  %v1353_v41 = vsel %vm1268_vm9, %v1352_v6, %v6295_v26 }
 0x1c1   : > { %5117 = vmatpush3.bf16.msra.mxu1 %v5114_v20  ;;  %v1237_v8 = vshrl.u32 %v1219_v36, %v1235_v45  ;;  %v1240_v55 = vadd.s32 127, %v1239_v52  ;;  %v294_v20 = vld [vmem:[#allocation2 + $0x60] sm:$0xff]  ;;  %5147 = vmatprep.subr.bf16.mxu0 %v6463_v37  ;;  %v5134_v45 = vpack.c.bf16 %v297_v7, %v296_v23 }
 0x1c2   : > { %5119 = vmatprep.subr.bf16.mxu1 %v5118_v46  ;;  %v5130_v31 = vpack.c.bf16 %v295_v5, %v294_v20  ;;  %5149 = vmatpush3.bf16.msra.mxu0 %v6463_v37 }
 0x1c3   : > { %v1238_v2 = vor.u32 %v1237_v8, %v1236_v28  ;;  %v1241_v9 = vshll.u32 %v1240_v55, 23  ;;  %5151 = vmatprep.subr.bf16.mxu0 %v6484_v12  ;;  %v1250_v28 = vsel %vm1165_vm11, %v1249_v48, %v6389_v29  ;;  %v1355_v8 = vsel %vm6471_vm10, 0, %v1353_v41  ;;  %v5753_v63 = vpop.eup %5752 }
 0x1c4   : > { %v1252_v26 = vsel %vm1164_vm12, 0, %v1250_v28  ;;  %v1774_v55 = vadd.s32 3, %v1355_v8  ;;  %v5755_v62 = vpop.eup %5754  ;;  %v1050_v29 = vand.u32 3, %v6362_v32  ;;  %v1365_v11 = vxor.u32 2147483648, %v5753_v63 }
 0x1c5   : > { %5121 = vmatpush3.bf16.msra.mxu1 %v5118_v46  ;;  %v1242_v16 = vor.u32 4788187, %v1241_v9  ;;  %v1245_v25 = vcvt.s32.f32 %v1238_v2  ;;  %v1670_v2 = vadd.s32 3, %v1252_v26  ;;  %v1362_v9 = vxor.u32 2147483648, %v5755_v62 }
 0x1c6   : > { %5123 = vmatprep.subr.bf16.mxu1 %v5122_v56  ;;  %5153 = vmatpush3.bf16.msra.mxu0 %v6484_v12  ;;  %v1775_v24 = vand.u32 3, %v1774_v55  ;;  %vm1052_vm3 = vcmp.eq.s32.totalorder %v1050_v29, 0  ;;  %vm1055_vm4 = vcmp.eq.s32.totalorder %v1050_v29, 2  ;;  %vm1051_vm10 = vcmp.lt.s32.totalorder %v1050_v29, 2  ;;  %v355_v55 = vld [vmem:[#allocation2 + $0x248] sm:$0xff]  ;;  %v358_v29 = vld [vmem:[#allocation2 + $0x260] sm:$0xff] }
 0x1c7   : > { %v1243_v38 = vand.u32 2147483647, %v1242_v16  ;;  %v1054_v35 = vsel %vm1052_vm3, %v6385_v51, %v1053_v1  ;;  %v1057_v14 = vsel %vm1055_vm4, %v1056_v27, %v6387_v43  ;;  %v1161_v51 = vsel %vm1154_vm14, %v1157_v18, %v1160_v40 }
 0x1c8   : > { %vm1777_vm1 = vcmp.eq.s32.totalorder %v1775_v24, 0  ;;  %vm1780_vm2 = vcmp.eq.s32.totalorder %v1775_v24, 2  ;;  %vm1776_vm9 = vcmp.lt.s32.totalorder %v1775_v24, 2  ;;  %v1058_v23 = vsel %vm1051_vm10, %v1054_v35, %v1057_v14 }
 0x1c9   : > { %5125 = vmatpush3.bf16.msra.mxu1 %v5122_v56  ;;  %v1246_v46 = vmul.f32 %v1245_v25, %v1243_v38  ;;  %v1779_v5 = vsel %vm1777_vm1, %v5753_v63, %v1362_v9  ;;  %v1782_v6 = vsel %vm1780_vm2, %v1365_v11, %v5755_v62  ;;  %v1256_v38 = vand.u32 3, %v1252_v26  ;;  %v354_v26 = vld [vmem:[#allocation2 + $0x240] sm:$0xff] }
 0x1ca   : > { %5127 = vmatprep.subr.bf16.mxu1 %v5126_v17  ;;  %v1059_v27 = vsel %vm1049_vm6, nan, %v1058_v23  ;;  %v1162_v28 = vsel %vm1152_vm7, nan, %v1161_v51  ;;  %v2077_v10 = vand.u32 4294901760, %v354_v26  ;;  %v2089_v40 = vand.u32 4294901760, %v358_v29 }
 0x1cb   : > { %v1247_v36 = vxor.u32 2147483648, %v1246_v46  ;;  %vm1261_vm13 = vcmp.eq.s32.totalorder %v1256_v38, 2  ;;  %vm1257_vm1 = vcmp.lt.s32.totalorder %v1256_v38, 2 }
 0x1cd   : > { %5129 = vmatpush3.bf16.msra.mxu1 %v5126_v17  ;;  %v1248_v52 = vsel %vm1165_vm11, %v1247_v36, %v1246_v46  ;;  %v1671_v17 = vand.u32 3, %v1670_v2  ;;  %v1359_v46 = vand.u32 3, %v1355_v8  ;;  %v357_v2 = vld [vmem:[#allocation2 + $0x258] sm:$0xff] }
 0x1ce   : > { %5131 = vmatprep.subr.bf16.mxu1 %v5130_v31  ;;  %v1251_v56 = vsel %vm1164_vm12, %v6115_v13, %v1248_v52  ;;  %vm1258_vm12 = vcmp.eq.s32.totalorder %v1256_v38, 0  ;;  %v6539_v13 = vpop.f32.mrb[5].mxu0  ;;  %v6558_v38 = vsub.f32 %v6420_v57, %v2056_v42 }
 0x1cf   : > { %5756 = vcosq.f32 %v1251_v56  ;;  %vm1676_vm5 = vcmp.eq.s32.totalorder %v1671_v17, 2  ;;  %vm1673_vm8 = vcmp.eq.s32.totalorder %v1671_v17, 0  ;;  %vm1672_vm11 = vcmp.lt.s32.totalorder %v1671_v17, 2  ;;  %v6541_v4 = vpop.f32.mrb[6].mxu0  ;;  %v359_v17 = vld [vmem:[#allocation2 + $0x268] sm:$0xff] }
 0x1d0   : > { %5758 = vsinq.f32 %v1251_v56  ;;  %vm1361_vm2 = vcmp.eq.s32.totalorder %v1359_v46, 0  ;;  %vm1364_vm3 = vcmp.eq.s32.totalorder %v1359_v46, 2  ;;  %vm1360_vm4 = vcmp.lt.s32.totalorder %v1359_v46, 2 }
 0x1d1   : > { %5133 = vmatpush3.bf16.msra.mxu1 %v5130_v31  ;;  %v1783_v31 = vsel %vm1776_vm9, %v1779_v5, %v1782_v6  ;;  %v1366_v52 = vsel %vm1364_vm3, %v1365_v11, %v5755_v62  ;;  %v2080_v62 = vand.u32 4294901760, %v355_v55  ;;  %v6543_v11 = vpop.f32.mrb[7].mxu0  ;;  %v361_v5 = vld [vmem:[#allocation2 + $0x278] sm:$0xff]  ;;  %v6553_v6 = vsub.f32 %v6418_v19, %v2053_v30 }
 0x1d2   : > { %5135 = vmatprep.subr.bf16.mxu1 %v5134_v45  ;;  %v1784_v43 = vsel %vm1358_vm0, nan, %v1783_v31  ;;  %v2098_v14 = vand.u32 4294901760, %v361_v5  ;;  %v7206_v19 = vand.u32 4294901760, %v6558_v38 }
 0x1d3   : > { %v6545_v18 = vpack.c.bf16 %v2080_v62, %v2077_v10  ;;  %v6591_v23 = vsub.f32 %v355_v55, %v2080_v62 }
 0x1d4   : > { %v2184_v30 = vsub.f32 %v6558_v38, %v7206_v19 }
 0x1d5   : > { %5137 = vmatpush3.bf16.msra.mxu1 %v5134_v45  ;;  %v1363_v45 = vsel %vm1361_vm2, %v5753_v63, %v1362_v9  ;;  %v356_v63 = vld [vmem:[#allocation2 + $0x250] sm:$0xff]  ;;  %v2086_v9 = vand.u32 4294901760, %v357_v2  ;;  %5155 = vmatprep.subr.bf16.mxu0 %v6545_v18 }
 0x1d6   : > { %5331 = vmatprep.subr.bf16.mxu1 %v6437_v49  ;;  %v1367_v8 = vsel %vm1360_vm4, %v1363_v45, %v1366_v52  ;;  %v2083_v24 = vand.u32 4294901760, %v356_v63  ;;  %5157 = vmatpush3.bf16.msra.mxu0 %v6545_v18  ;;  %v2185_v31 = vand.u32 4294901760, %v2184_v30 }
 0x1d7   : > { %v1368_v0 = vsel %vm1358_vm0, nan, %v1367_v8 }
 0x1d9   : > { %v5757_v16 = vpop.eup %5756 }
 0x1da   : > { %v5759_v32 = vpop.eup %5758  ;;  %v1262_v20 = vxor.u32 2147483648, %v5757_v16 }
 0x1db   : > { %v1259_v25 = vxor.u32 2147483648, %v5759_v32 }
 0x1dc   : > { %v1678_v54 = vsel %vm1676_vm5, %v1262_v20, %v5759_v32  ;;  %v1263_v41 = vsel %vm1261_vm13, %v1262_v20, %v5759_v32  ;;  %v360_v32 = vld [vmem:[#allocation2 + $0x270] sm:$0xff]  ;;  %v6547_v20 = vpack.c.bf16 %v2086_v9, %v2083_v24 }
 0x1dd   : > { %v1675_v59 = vsel %vm1673_vm8, %v5757_v16, %v1259_v25  ;;  %v1260_v7 = vsel %vm1258_vm12, %v5757_v16, %v1259_v25  ;;  %v2092_v16 = vand.u32 4294901760, %v359_v17  ;;  %v2095_v25 = vand.u32 4294901760, %v360_v32 }
 0x1de   : > { %v1679_v48 = vsel %vm1672_vm11, %v1675_v59, %v1678_v54  ;;  %v1264_v36 = vsel %vm1257_vm1, %v1260_v7, %v1263_v41  ;;  %5159 = vmatprep.subr.bf16.mxu0 %v6547_v20  ;;  %v7207_v54 = vand.u32 4294901760, %v6553_v6  ;;  %v7199_v7 = vand.u32 4294901760, %v6591_v23 }
 0x1df   : > { %v1680_v1 = vsel %vm1255_vm15, nan, %v1679_v48  ;;  %v1265_v56 = vsel %vm1255_vm15, nan, %v1264_v36  ;;  %v6563_v35 = vpack.c.bf16 %v2092_v16, %v2089_v40  ;;  %5161 = vmatpush3.bf16.msra.mxu0 %v6547_v20  ;;  %v6577_v42 = vpack.c.bf16 %v2098_v14, %v2095_v25 }
 0x1e0   : > { %4493 = vmatprep.mubr.f32.mxu1 %v1680_v1  ;;  %v2177_v57 = vsub.f32 %v6553_v6, %v7207_v54  ;;  %v6589_v48 = vsub.f32 %v354_v26, %v2077_v10  ;;  %v2240_v51 = vsub.f32 %v6591_v23, %v7199_v7  ;;  %v6616_v26 = vsub.f32 %v359_v17, %v2092_v16 }
 0x1e1   : > { %4494 = vmatmul.mubr.f32.gmra.mrb[2].mxu1 %v1784_v43  ;;  %5163 = vmatprep.subr.bf16.mxu0 %v6563_v35  ;;  %v6603_v43 = vsub.f32 %v356_v63, %v2083_v24  ;;  %v6631_v17 = vsub.f32 %v361_v5, %v2098_v14  ;;  %v6647_v14 = vpack.c.bf16 %v6558_v38, %v6553_v6 }
 0x1e2   : > { %4528 = vmatprep.mubr.f32.mxu1 %v1059_v27  ;;  %v2178_v59 = vand.u32 4294901760, %v2177_v57  ;;  %v7200_v1 = vand.u32 4294901760, %v6589_v48  ;;  %v6605_v27 = vsub.f32 %v357_v2, %v2086_v9  ;;  %v2241_v45 = vand.u32 4294901760, %v2240_v51 }
 0x1e3   : > { %5165 = vmatpush3.bf16.msra.mxu0 %v6563_v35  ;;  %v7198_v52 = vand.u32 4294901760, %v6603_v43  ;;  %v7195_v62 = vand.u32 4294901760, %v6616_v26  ;;  %v6629_v9 = vsub.f32 %v360_v32, %v2095_v25 }
 0x1e4   : > { %5167 = vmatprep.subr.bf16.mxu0 %v6577_v42  ;;  %v6583_v46 = vpack.c.bf16 %v2185_v31, %v2178_v59  ;;  %v2233_v41 = vsub.f32 %v6589_v48, %v7200_v1  ;;  %v7193_v59 = vand.u32 4294901760, %v6631_v17 }
 0x1e5   : > { %4529 = vmatmul.mubr.f32.vlgmr.msra.gmra.mrb[0].mxu1 %v1162_v28  ;;  %v7197_v28 = vand.u32 4294901760, %v6605_v27  ;;  %v2247_v8 = vsub.f32 %v6603_v43, %v7198_v52  ;;  %v7194_v30 = vand.u32 4294901760, %v6629_v9 }
 0x1e6   : > { %4531 = vmatprep.mubr.f32.mxu1 %v1265_v56  ;;  %5333 = vmatpush3.bf16.msra.mxu1 %v6437_v49  ;;  %v2234_v36 = vand.u32 4294901760, %v2233_v41  ;;  %v2282_v32 = vsub.f32 %v6631_v17, %v7193_v59  ;;  %v6725_v59 = vsub.f32 %v6444_v53, %v2074_v3 }
 0x1e7   : > { %5335 = vmatprep.subr.bf16.mxu1 %v6456_v34  ;;  %5169 = vmatpush3.bf16.msra.mxu0 %v6577_v42  ;;  %v2254_v55 = vsub.f32 %v6605_v27, %v7197_v28  ;;  %v2248_v63 = vand.u32 4294901760, %v2247_v8  ;;  %v2275_v41 = vsub.f32 %v6629_v9, %v7194_v30 }
 0x1e8   : > { %5171 = vmatprep.subr.bf16.mxu0 %v6583_v46  ;;  %v6609_v56 = vpack.c.bf16 %v2241_v45, %v2234_v36  ;;  %v2283_v25 = vand.u32 4294901760, %v2282_v32  ;;  %v6653_v36 = vpack.c.bf16 %v6591_v23, %v6589_v48  ;;  %v6657_v45 = vpack.c.bf16 %v6605_v27, %v6603_v43 }
 0x1e9   : > { %4532 = vmatmul.mubr.f32.gmra.mrb[2].mxu1 %v1368_v0  ;;  %v6614_v0 = vsub.f32 %v358_v29, %v2089_v40  ;;  %v2255_v2 = vand.u32 4294901760, %v2254_v55  ;;  %v2268_v29 = vsub.f32 %v6616_v26, %v7195_v62  ;;  %v2276_v5 = vand.u32 4294901760, %v2275_v41 }
 0x1ea   : > { %5337 = vmatpush3.bf16.msra.mxu1 %v6456_v34  ;;  %v6665_v55 = vpack.c.bf16 %v6631_v17, %v6629_v9 }
 0x1eb   : > { %5339 = vmatprep.subr.bf16.mxu1 %v6463_v37  ;;  %v7196_v10 = vand.u32 4294901760, %v6614_v0  ;;  %v6633_v40 = vpack.c.bf16 %v2255_v2, %v2248_v63  ;;  %v2269_v57 = vand.u32 4294901760, %v2268_v29  ;;  %v6649_v51 = vpack.c.bf16 %v2283_v25, %v2276_v5 }
 0x1ec   : > { %v6661_v8 = vpack.c.bf16 %v6616_v26, %v6614_v0  ;;  %v6670_v63 = vsub.f32 %v6422_v21, %v2059_v39  ;;  %v6675_v2 = vsub.f32 %v6426_v44, %v2062_v33  ;;  %v6684_v21 = vsub.f32 %v6428_v60, %v2065_v22 }
 0x1ed   : > { %v2261_v24 = vsub.f32 %v6614_v0, %v7196_v10  ;;  %v6689_v44 = vsub.f32 %v6430_v15, %v2068_v47 }
 0x1ee   : > { %5341 = vmatpush3.bf16.msra.mxu1 %v6463_v37  ;;  %v7205_v41 = vand.u32 4294901760, %v6670_v63  ;;  %v7204_v32 = vand.u32 4294901760, %v6675_v2 }
 0x1ef   : > { %5343 = vmatprep.subr.bf16.mxu1 %v6484_v12  ;;  %v2262_v16 = vand.u32 4294901760, %v2261_v24  ;;  %v4042_v24 = vld [vmem:[#allocation5] ss:$0 sm:$0xff] }
 0x1f0   : > { %v2191_v60 = vsub.f32 %v6670_v63, %v7205_v41  ;;  %v2198_v15 = vsub.f32 %v6675_v2, %v7204_v32 }
 0x1f1   : > { %v6637_v31 = vpack.c.bf16 %v2269_v57, %v2262_v16 }
 0x1f2   : > { %5345 = vmatpush3.bf16.msra.mxu1 %v6484_v12  ;;  %v2192_v62 = vand.u32 4294901760, %v2191_v60  ;;  %v2199_v10 = vand.u32 4294901760, %v2198_v15 }
 0x1f3   : > { %5347 = vmatprep.subr.bf16.mxu1 %v6545_v18 }
 0x1f4   : > { %v6763_v7 = vpack.c.bf16 %v2199_v10, %v2192_v62 }
 0x1f6   : > { %5349 = vmatpush3.bf16.msra.mxu1 %v6545_v18 }
 0x1f7   : > { %5351 = vmatprep.subr.bf16.mxu1 %v6547_v20 }
 0x1fa   : > { %5353 = vmatpush3.bf16.msra.mxu1 %v6547_v20 }
 0x1fb   : > { %5355 = vmatprep.subr.bf16.mxu1 %v6563_v35 }
 0x1fe   : > { %5357 = vmatpush3.bf16.msra.mxu1 %v6563_v35 }
 0x1ff   : > { %5359 = vmatprep.subr.bf16.mxu1 %v6577_v42 }
 0x202   : > { %5361 = vmatpush3.bf16.msra.mxu1 %v6577_v42 }
 0x203   : > { %5363 = vmatprep.subr.bf16.mxu1 %v6583_v46 }
 0x2b8   : > { %v4530_v29 = vpop.f32.mrb[0].mxu1 }
 0x2b9   : > { %v5586_v16 = vadd.f32 %v6537_v61, %v4530_v29  ;;  %v1936_v57 = vpop.f32.mrb[1].mxu1 }
 0x2ba   : > { %v5587_v5 = vadd.f32 %v6539_v13, %v1936_v57  ;;  %v7201_v57 = vand.u32 4294901760, %v6689_v44 }
 0x2bb   : > { %v6691_v39 = vadd.f32 %v5586_v16, %v4042_v24  ;;  %v7202_v16 = vand.u32 4294901760, %v6684_v21 }
 0x2bc   : > { %v6693_v33 = vadd.f32 %v5587_v5, %v4042_v24  ;;  %v4533_v61 = vpop.f32.mrb[2].mxu1  ;;  %v2212_v3 = vsub.f32 %v6689_v44, %v7201_v57 }
 0x2bd   : > { %v6696_v25 = vand.u32 4294901760, %v6691_v39  ;;  %v5588_v13 = vadd.f32 %v6541_v4, %v4533_v61  ;;  %v1946_v29 = vpop.f32.mrb[3].mxu1  ;;  %v6720_v61 = vsub.f32 %v6439_v50, %v2071_v58  ;;  %v2205_v53 = vsub.f32 %v6684_v21, %v7202_v16 }
 0x2be   : > { %v6706_v22 = vand.u32 4294901760, %v6693_v33  ;;  %v5589_v47 = vadd.f32 %v6543_v11, %v1946_v29  ;;  %v2213_v32 = vand.u32 4294901760, %v2212_v3 }
 0x2bf   : > { %v6713_v4 = vsub.f32 %v6691_v39, %v6696_v25  ;;  %v6715_v5 = vadd.f32 %v5588_v13, %v4042_v24  ;;  %v7208_v15 = vand.u32 4294901760, %v6720_v61 }
 0x2c0   : > { %v6729_v11 = vsub.f32 %v6693_v33, %v6706_v22  ;;  %v6731_v29 = vadd.f32 %v5589_v47, %v4042_v24  ;;  %v2225_v47 = vand.u32 4294901760, %v6725_v59 }
 0x2c1   : > { %v7203_v30 = vand.u32 4294901760, %v6713_v4  ;;  %v6735_v13 = vand.u32 4294901760, %v6715_v5  ;;  %v2219_v54 = vsub.f32 %v6720_v61, %v7208_v15 }
 0x2c2   : > { %v6738_v50 = vand.u32 4294901760, %v6731_v29  ;;  %v2135_v58 = vand.u32 4294901760, %v6729_v11  ;;  %v2226_v10 = vsub.f32 %v6725_v59, %v2225_v47 }
 0x2c3   : > { %v2146_v24 = vsub.f32 %v6713_v4, %v7203_v30  ;;  %v6752_v60 = vsub.f32 %v6715_v5, %v6735_v13  ;;  %v2206_v30 = vand.u32 4294901760, %v2205_v53 }
 0x2c4   : > { %v6758_v28 = vsub.f32 %v6731_v29, %v6738_v50  ;;  %v2136_v52 = vsub.f32 %v6729_v11, %v2135_v58  ;;  %v2227_v15 = vand.u32 4294901760, %v2226_v10 }
 0x2c5   : > { %v2165_v1 = vand.u32 4294901760, %v6752_v60  ;;  %v2147_v41 = vand.u32 4294901760, %v2146_v24  ;;  %v6781_v3 = vpack.c.bf16 %v2213_v32, %v2206_v30  ;;  %v2220_v24 = vand.u32 4294901760, %v2219_v54 }
 0x2c6   : > { %v2137_v57 = vand.u32 4294901760, %v2136_v52  ;;  %v2155_v16 = vand.u32 4294901760, %v6758_v28  ;;  %v6802_v54 = vpack.c.bf16 %v6675_v2, %v6670_v63  ;;  %v6818_v30 = vpack.c.bf16 %v6725_v59, %v6720_v61 }
 0x2c7   : > { %v2166_v19 = vsub.f32 %v6752_v60, %v2165_v1  ;;  %v7225_v32 = vand.u32 4294901760, %v6558_v38  ;;  %v7230_v38 = vand.u32 4294901760, %v6689_v44  ;;  %v7235_v59 = vand.u32 4294901760, %v6605_v27 }
 0x2c8   : > { %4574 = vmatprep.mubr.f32.mxu0 %v2137_v57  ;;  %v2156_v52 = vsub.f32 %v6758_v28, %v2155_v16  ;;  %v6786_v57 = vpack.c.bf16 %v2227_v15, %v2220_v24  ;;  %v7227_v15 = vand.u32 4294901760, %v6675_v2  ;;  %v7232_v2 = vand.u32 4294901760, %v6589_v48 }
 0x2c9   : > { %4575 = vmatmul.mubr.f32.vlgmr.msra.gmra.mrb[8].mxu0 %v2147_v41  ;;  %v2167_v53 = vand.u32 4294901760, %v2166_v19  ;;  %v6810_v19 = vpack.c.bf16 %v6689_v44, %v6684_v21  ;;  %v7224_v41 = vand.u32 4294901760, %v6553_v6  ;;  %v7229_v6 = vand.u32 4294901760, %v6684_v21 }
 0x2ca   : > { %5173 = vmatpush3.bf16.msra.mxu0 %v6583_v46  ;;  %v2157_v62 = vand.u32 4294901760, %v2156_v52  ;;  %v7228_v52 = vand.u32 4294901760, %v6713_v4  ;;  %v7234_v44 = vand.u32 4294901760, %v6603_v43  ;;  %v7236_v48 = vand.u32 4294901760, %v6614_v0 }
 0x2cb   : > { %5175 = vmatprep.subr.bf16.mxu0 %v6763_v7  ;;  %v7238_v43 = vand.u32 4294901760, %v6629_v9  ;;  %v7239_v27 = vand.u32 4294901760, %v6631_v17 }
 0x2cc   : > { %4577 = vmatprep.mubr.f32.mxu0 %v2157_v62  ;;  %v6875_v62 = vpack.c.bf16 %v7230_v38, %v7229_v6 }
 0x2cd   : > { %4578 = vmatmul.mubr.f32.gmra.mrb[10].mxu0 %v2167_v53 }
 0x2ce   : > { %5177 = vmatpush3.bf16.msra.mxu0 %v6763_v7  ;;  %4612 = vmatprep.mubr.f32.mxu0 %v6706_v22 }
 0x2cf   : > { %5179 = vmatprep.subr.bf16.mxu0 %v6781_v3 }
 0x2d2   : > { %5181 = vmatpush3.bf16.msra.mxu0 %v6781_v3 }
 0x2d3   : > { %5183 = vmatprep.subr.bf16.mxu0 %v6786_v57 }
 0x2d6   : > { %5185 = vmatpush3.bf16.msra.mxu0 %v6786_v57 }
 0x2d7   : > { %5187 = vmatprep.subr.bf16.mxu0 %v6609_v56 }
 0x2da   : > { %5189 = vmatpush3.bf16.msra.mxu0 %v6609_v56 }
 0x2db   : > { %5191 = vmatprep.subr.bf16.mxu0 %v6633_v40 }
 0x2de   : > { %5193 = vmatpush3.bf16.msra.mxu0 %v6633_v40 }
 0x2df   : > { %5195 = vmatprep.subr.bf16.mxu0 %v6637_v31 }
 0x2e2   : > { %5197 = vmatpush3.bf16.msra.mxu0 %v6637_v31 }
 0x2e3   : > { %5199 = vmatprep.subr.bf16.mxu0 %v6649_v51 }
 0x2e6   : > { %5201 = vmatpush3.bf16.msra.mxu0 %v6649_v51 }
 0x2e7   : > { %5203 = vmatprep.subr.bf16.mxu0 %v6647_v14 }
 0x2e9   : > { %4613 = vmatmul.mubr.f32.vlgmr.msra.gmra.mrb[8].mxu0 %v6696_v25 }
 0x2ea   : > { %4615 = vmatprep.mubr.f32.mxu0 %v6738_v50  ;;  %5205 = vmatpush3.bf16.msra.mxu0 %v6647_v14 }
 0x2eb   : > { %5207 = vmatprep.subr.bf16.mxu0 %v6802_v54 }
 0x2ed   : > { %4616 = vmatmul.mubr.f32.gmra.mrb[10].mxu0 %v6735_v13 }
 0x2ee   : > { %5209 = vmatpush3.bf16.msra.mxu0 %v6802_v54  ;;  %4650 = vmatprep.mubr.f32.mxu0 %v6729_v11  ;;  %v6855_v11 = vpack.c.bf16 %v7225_v32, %v7224_v41 }
 0x2ef   : > { %5211 = vmatprep.subr.bf16.mxu0 %v6810_v19 }
 0x2f2   : > { %5213 = vmatpush3.bf16.msra.mxu0 %v6810_v19 }
 0x2f3   : > { %5215 = vmatprep.subr.bf16.mxu0 %v6818_v30 }
 0x2f6   : > { %5217 = vmatpush3.bf16.msra.mxu0 %v6818_v30 }
 0x2f7   : > { %5219 = vmatprep.subr.bf16.mxu0 %v6653_v36 }
 0x2fa   : > { %5221 = vmatpush3.bf16.msra.mxu0 %v6653_v36 }
 0x2fb   : > { %5223 = vmatprep.subr.bf16.mxu0 %v6657_v45 }
 0x2fe   : > { %5225 = vmatpush3.bf16.msra.mxu0 %v6657_v45 }
 0x2ff   : > { %5227 = vmatprep.subr.bf16.mxu0 %v6661_v8 }
 0x302   : > { %5229 = vmatpush3.bf16.msra.mxu0 %v6661_v8 }
 0x303   : > { %5231 = vmatprep.subr.bf16.mxu0 %v6665_v55 }
 0x306   : > { %5233 = vmatpush3.bf16.msra.mxu0 %v6665_v55 }
 0x307   : > { %5235 = vmatprep.subr.bf16.mxu0 %v6437_v49 }
 0x309   : > { %4651 = vmatmul.mubr.f32.vlgmr.msra.gmra.mrb[8].mxu0 %v6713_v4 }
 0x30a   : > { %4653 = vmatprep.mubr.f32.mxu0 %v6758_v28  ;;  %5237 = vmatpush3.bf16.msra.mxu0 %v6437_v49  ;;  %v7231_v28 = vand.u32 4294901760, %v6720_v61  ;;  %v6918_v61 = vpack.c.bf16 %v7239_v27, %v7238_v43 }
 0x30b   : > { %5239 = vmatprep.subr.bf16.mxu0 %v6456_v34 }
 0x30d   : > { %4654 = vmatmul.mubr.f32.gmra.mrb[10].mxu0 %v6752_v60 }
 0x30e   : > { %5241 = vmatpush3.bf16.msra.mxu0 %v6456_v34  ;;  %4688 = vmatprep.mubr.f32.mxu0 %v2135_v58  ;;  %v7226_v58 = vand.u32 4294901760, %v6670_v63  ;;  %v6886_v63 = vpack.c.bf16 %v2225_v47, %v7231_v28 }
 0x30f   : > { %5243 = vmatprep.subr.bf16.mxu0 %v6463_v37 }
 0x310   : > { %v6863_v10 = vpack.c.bf16 %v7227_v15, %v7226_v58 }
 0x312   : > { %5245 = vmatpush3.bf16.msra.mxu0 %v6463_v37 }
 0x313   : > { %5247 = vmatprep.subr.bf16.mxu0 %v6484_v12 }
 0x316   : > { %5249 = vmatpush3.bf16.msra.mxu0 %v6484_v12 }
 0x317   : > { %5251 = vmatprep.subr.bf16.mxu0 %v6545_v18 }
 0x31a   : > { %5253 = vmatpush3.bf16.msra.mxu0 %v6545_v18 }
 0x31b   : > { %5255 = vmatprep.subr.bf16.mxu0 %v6547_v20 }
 0x31e   : > { %5257 = vmatpush3.bf16.msra.mxu0 %v6547_v20 }
 0x31f   : > { %5259 = vmatprep.subr.bf16.mxu0 %v6563_v35 }
 0x322   : > { %5261 = vmatpush3.bf16.msra.mxu0 %v6563_v35 }
 0x323   : > { %5263 = vmatprep.subr.bf16.mxu0 %v6577_v42 }
 0x326   : > { %5265 = vmatpush3.bf16.msra.mxu0 %v6577_v42 }
 0x327   : > { %5267 = vmatprep.subr.bf16.mxu0 %v6855_v11 }
 0x329   : > { %4689 = vmatmul.mubr.f32.vlgmr.msra.gmra.mrb[8].mxu0 %v7228_v52 }
 0x32a   : > { %4691 = vmatprep.mubr.f32.mxu0 %v2155_v16  ;;  %5269 = vmatpush3.bf16.msra.mxu0 %v6855_v11  ;;  %v6902_v16 = vpack.c.bf16 %v7235_v59, %v7234_v44 }
 0x32b   : > { %5271 = vmatprep.subr.bf16.mxu0 %v6863_v10 }
 0x32d   : > { %4692 = vmatmul.mubr.f32.gmra.mrb[10].mxu0 %v2165_v1  ;;  %v7233_v1 = vand.u32 4294901760, %v6591_v23  ;;  %v7237_v23 = vand.u32 4294901760, %v6616_v26 }
 0x32e   : > { %5273 = vmatpush3.bf16.msra.mxu0 %v6863_v10  ;;  %4726 = vmatprep.mubr.f32.mxu0 %v6706_v22 }
 0x32f   : > { %5275 = vmatprep.subr.bf16.mxu0 %v6875_v62  ;;  %v6894_v21 = vpack.c.bf16 %v7233_v1, %v7232_v2  ;;  %v6910_v4 = vpack.c.bf16 %v7237_v23, %v7236_v48 }
 0x332   : > { %5277 = vmatpush3.bf16.msra.mxu0 %v6875_v62 }
 0x333   : > { %5279 = vmatprep.subr.bf16.mxu0 %v6886_v63 }
 0x336   : > { %5281 = vmatpush3.bf16.msra.mxu0 %v6886_v63 }
 0x337   : > { %5283 = vmatprep.subr.bf16.mxu0 %v6894_v21 }
 0x33a   : > { %5285 = vmatpush3.bf16.msra.mxu0 %v6894_v21 }
 0x33b   : > { %5287 = vmatprep.subr.bf16.mxu0 %v6902_v16 }
 0x33e   : > { %5289 = vmatpush3.bf16.msra.mxu0 %v6902_v16 }
 0x33f   : > { %5291 = vmatprep.subr.bf16.mxu0 %v6910_v4 }
 0x342   : > { %5293 = vmatpush3.bf16.msra.mxu0 %v6910_v4 }
 0x343   : > { %5295 = vmatprep.subr.bf16.mxu0 %v6918_v61 }
 0x346   : > { %5297 = vmatpush3.bf16.msra.mxu0 %v6918_v61 }
 0x347   : > { %5299 = vmatprep.subr.bf16.mxu0 %v6437_v49 }
 0x349   : > { %4727 = vmatmul.mubr.f32.vlgmr.msra.gmra.mrb[8].mxu0 %v6696_v25 }
 0x34a   : > { %4729 = vmatprep.mubr.f32.mxu0 %v6738_v50  ;;  %5301 = vmatpush3.bf16.msra.mxu0 %v6437_v49 }
 0x34b   : > { %5303 = vmatprep.subr.bf16.mxu0 %v6456_v34 }
 0x34d   : > { %4730 = vmatmul.mubr.f32.gmra.mrb[10].mxu0 %v6735_v13 }
 0x34e   : > { %5305 = vmatpush3.bf16.msra.mxu0 %v6456_v34  ;;  %4764 = vmatprep.mubr.f32.mxu0 %v6706_v22 }
 0x34f   : > { %5307 = vmatprep.subr.bf16.mxu0 %v6463_v37 }
 0x352   : > { %5309 = vmatpush3.bf16.msra.mxu0 %v6463_v37 }
 0x353   : > { %5311 = vmatprep.subr.bf16.mxu0 %v6484_v12 }
 0x356   : > { %5313 = vmatpush3.bf16.msra.mxu0 %v6484_v12 }
 0x357   : > { %5315 = vmatprep.subr.bf16.mxu0 %v6545_v18 }
 0x35a   : > { %5317 = vmatpush3.bf16.msra.mxu0 %v6545_v18 }
 0x35b   : > { %5319 = vmatprep.subr.bf16.mxu0 %v6547_v20 }
 0x35e   : > { %5321 = vmatpush3.bf16.msra.mxu0 %v6547_v20 }
 0x35f   : > { %5323 = vmatprep.subr.bf16.mxu0 %v6563_v35 }
 0x362   : > { %5325 = vmatpush3.bf16.msra.mxu0 %v6563_v35 }
 0x363   : > { %5327 = vmatprep.subr.bf16.mxu0 %v6577_v42 }
 0x366   : > { %5329 = vmatpush3.bf16.msra.mxu0 %v6577_v42 }
 0x369   : > { %4765 = vmatmul.mubr.f32.vlgmr.msra.gmra.mrb[8].mxu0 %v6696_v25 }
 0x36a   : > { %4767 = vmatprep.mubr.f32.mxu0 %v6738_v50 }
 0x36d   : > { %4768 = vmatmul.mubr.f32.gmra.mrb[10].mxu0 %v6735_v13 }
 0x43c   : > { %v4766_v0 = vpop.f32.mrb[8].mxu0 }
 0x43d   : > { %v6947_v26 = vsub.f32 %v6691_v39, %v4766_v0  ;;  %v2800_v9 = vpop.f32.mrb[9].mxu0 }
 0x43e   : > { %v6950_v17 = vsub.f32 %v6693_v33, %v2800_v9  ;;  %v4043_v9 = vld [vmem:[#allocation5 + $0x1] ss:$0 sm:$0xff] }
 0x43f   : > { %v2827_v22 = vmul.f32 %v6947_v26, %v6947_v26 }
 0x440   : > { %v2826_v60 = vmul.f32 %v6950_v17, %v6950_v17  ;;  %v4769_v47 = vpop.f32.mrb[10].mxu0 }
 0x441   : > { %v6956_v25 = vand.u32 4294901760, %v2827_v22  ;;  %v6959_v50 = vsub.f32 %v6715_v5, %v4769_v47  ;;  %v2812_v13 = vpop.f32.mrb[11].mxu0  ;;  %v4044_v47 = vld [vmem:[#allocation5 + $0x2] ss:$0 sm:$0xff] }
 0x442   : > { %v6961_v53 = vand.u32 4294901760, %v2826_v60  ;;  %v6964_v39 = vsub.f32 %v6731_v29, %v2812_v13 }
 0x443   : > { %v6967_v33 = vsub.f32 %v2827_v22, %v6956_v25  ;;  %v2829_v24 = vmul.f32 %v6959_v50, %v6959_v50 }
 0x444   : > { %v6972_v41 = vsub.f32 %v2826_v60, %v6961_v53  ;;  %v2828_v32 = vmul.f32 %v6964_v39, %v6964_v39 }
 0x445   : > { %v2923_v5 = vand.u32 4294901760, %v6967_v33  ;;  %v6977_v58 = vand.u32 4294901760, %v2829_v24 }
 0x446   : > { %v6979_v15 = vand.u32 4294901760, %v2828_v32  ;;  %v2913_v29 = vand.u32 4294901760, %v6972_v41 }
 0x447   : > { %v2924_v52 = vsub.f32 %v6967_v33, %v2923_v5  ;;  %v6986_v6 = vsub.f32 %v2829_v24, %v6977_v58 }
 0x448   : > { %v6989_v38 = vsub.f32 %v2828_v32, %v6979_v15  ;;  %v2914_v28 = vsub.f32 %v6972_v41, %v2913_v29 }
 0x449   : > { %v2943_v2 = vand.u32 4294901760, %v6986_v6  ;;  %v2925_v59 = vand.u32 4294901760, %v2924_v52 }
 0x44a   : > { %v2915_v1 = vand.u32 4294901760, %v2914_v28  ;;  %v2933_v44 = vand.u32 4294901760, %v6989_v38 }
 0x44b   : > { %v2944_v48 = vsub.f32 %v6986_v6, %v2943_v2 }
 0x44c   : > { %4802 = vmatprep.mubr.f32.mxu1 %v2915_v1  ;;  %v2934_v23 = vsub.f32 %v6989_v38, %v2933_v44  ;;  %v3717_v1 = vld [vmem:[%s273_s16] sm:$0xff] }
 0x44d   : > { %4803 = vmatmul.mubr.f32.vlgmr.msra.gmra.mrb[4].mxu1 %v2925_v59  ;;  %v2945_v27 = vand.u32 4294901760, %v2944_v48 }
 0x44e   : > { %5365 = vmatpush3.bf16.msra.mxu1 %v6583_v46  ;;  %v2935_v43 = vand.u32 4294901760, %v2934_v23  ;;  %v314_v46 = vld [vmem:[#allocation2 + $0x100] sm:$0xff] }
 0x44f   : > { %5367 = vmatprep.subr.bf16.mxu1 %v6763_v7 }
 0x450   : > { %4805 = vmatprep.mubr.f32.mxu1 %v2935_v43 }
 0x451   : > { %4806 = vmatmul.mubr.f32.gmra.mrb[6].mxu1 %v2945_v27  ;;  %v3719_v27 = vld [vmem:[%s273_s16 + $0x10] sm:$0xff] }
 0x452   : > { %5369 = vmatpush3.bf16.msra.mxu1 %v6763_v7  ;;  %4840 = vmatprep.mubr.f32.mxu1 %v6961_v53  ;;  %v315_v7 = vld [vmem:[#allocation2 + $0x108] sm:$0xff] }
 0x453   : > { %5371 = vmatprep.subr.bf16.mxu1 %v6781_v3 }
 0x456   : > { %5373 = vmatpush3.bf16.msra.mxu1 %v6781_v3  ;;  %v327_v3 = vld [vmem:[#allocation2 + $0x168] sm:$0xff] }
 0x457   : > { %5375 = vmatprep.subr.bf16.mxu1 %v6786_v57 }
 0x45a   : > { %5377 = vmatpush3.bf16.msra.mxu1 %v6786_v57 }
 0x45b   : > { %5379 = vmatprep.subr.bf16.mxu1 %v6609_v56 }
 0x45e   : > { %5381 = vmatpush3.bf16.msra.mxu1 %v6609_v56  ;;  %v316_v56 = vld [vmem:[#allocation2 + $0x110] sm:$0xff] }
 0x45f   : > { %5383 = vmatprep.subr.bf16.mxu1 %v6633_v40 }
 0x462   : > { %5385 = vmatpush3.bf16.msra.mxu1 %v6633_v40  ;;  %v5522_v40 = vpack.c.bf16 %v315_v7, %v314_v46  ;;  %v3718_v46 = vld [vmem:[%s273_s16 + $0x8] sm:$0xff] }
 0x463   : > { %5387 = vmatprep.subr.bf16.mxu1 %v6637_v31 }
 0x464   : > { %5523 = vmatprep.subr.bf16.mxu0 %v5522_v40 }
 0x465   : > { %5525 = vmatpush3.bf16.msra.mxu0 %v5522_v40 }
 0x466   : > { %5389 = vmatpush3.bf16.msra.mxu1 %v6637_v31  ;;  %v317_v31 = vld [vmem:[#allocation2 + $0x118] sm:$0xff] }
 0x467   : > { %5391 = vmatprep.subr.bf16.mxu1 %v6649_v51 }
 0x46a   : > { %5393 = vmatpush3.bf16.msra.mxu1 %v6649_v51  ;;  %v5526_v51 = vpack.c.bf16 %v317_v31, %v316_v56 }
 0x46b   : > { %5395 = vmatprep.subr.bf16.mxu1 %v6647_v14 }
 0x46c   : > { %5527 = vmatprep.subr.bf16.mxu0 %v5526_v51 }
 0x46d   : > { %4841 = vmatmul.mubr.f32.vlgmr.msra.gmra.mrb[4].mxu1 %v6956_v25  ;;  %5529 = vmatpush3.bf16.msra.mxu0 %v5526_v51  ;;  %v3720_v51 = vld [vmem:[%s273_s16 + $0x18] sm:$0xff] }
 0x46e   : > { %4843 = vmatprep.mubr.f32.mxu1 %v6979_v15  ;;  %5397 = vmatpush3.bf16.msra.mxu1 %v6647_v14  ;;  %v322_v14 = vld [vmem:[#allocation2 + $0x140] sm:$0xff] }
 0x46f   : > { %5399 = vmatprep.subr.bf16.mxu1 %v6802_v54 }
 0x471   : > { %4844 = vmatmul.mubr.f32.gmra.mrb[6].mxu1 %v6977_v58 }
 0x472   : > { %5401 = vmatpush3.bf16.msra.mxu1 %v6802_v54  ;;  %4878 = vmatprep.mubr.f32.mxu1 %v6972_v41  ;;  %v328_v54 = vld [vmem:[#allocation2 + $0x170] sm:$0xff] }
 0x473   : > { %5403 = vmatprep.subr.bf16.mxu1 %v6810_v19 }
 0x476   : > { %5405 = vmatpush3.bf16.msra.mxu1 %v6810_v19  ;;  %v329_v19 = vld [vmem:[#allocation2 + $0x178] sm:$0xff] }
 0x477   : > { %5407 = vmatprep.subr.bf16.mxu1 %v6818_v30 }
 0x47a   : > { %5409 = vmatpush3.bf16.msra.mxu1 %v6818_v30  ;;  %v5550_v30 = vpack.c.bf16 %v329_v19, %v328_v54 }
 0x47b   : > { %5411 = vmatprep.subr.bf16.mxu1 %v6653_v36 }
 0x47e   : > { %5413 = vmatpush3.bf16.msra.mxu1 %v6653_v36  ;;  %v323_v36 = vld [vmem:[#allocation2 + $0x148] sm:$0xff] }
 0x47f   : > { %5415 = vmatprep.subr.bf16.mxu1 %v6657_v45 }
 0x482   : > { %5417 = vmatpush3.bf16.msra.mxu1 %v6657_v45  ;;  %v324_v45 = vld [vmem:[#allocation2 + $0x150] sm:$0xff] }
 0x483   : > { %5419 = vmatprep.subr.bf16.mxu1 %v6661_v8 }
 0x486   : > { %5421 = vmatpush3.bf16.msra.mxu1 %v6661_v8 }
 0x487   : > { %5423 = vmatprep.subr.bf16.mxu1 %v6665_v55 }
 0x48a   : > { %5425 = vmatpush3.bf16.msra.mxu1 %v6665_v55  ;;  %v326_v55 = vld [vmem:[#allocation2 + $0x160] sm:$0xff] }
 0x48b   : > { %5427 = vmatprep.subr.bf16.mxu1 %v6437_v49  ;;  %v5546_v57 = vpack.c.bf16 %v327_v3, %v326_v55 }
 0x48d   : > { %4879 = vmatmul.mubr.f32.vlgmr.msra.gmra.mrb[4].mxu1 %v6967_v33 }
 0x48e   : > { %4881 = vmatprep.mubr.f32.mxu1 %v6989_v38  ;;  %5429 = vmatpush3.bf16.msra.mxu1 %v6437_v49 }
 0x48f   : > { %5431 = vmatprep.subr.bf16.mxu1 %v6456_v34 }
 0x491   : > { %4882 = vmatmul.mubr.f32.gmra.mrb[6].mxu1 %v6986_v6 }
 0x492   : > { %5433 = vmatpush3.bf16.msra.mxu1 %v6456_v34  ;;  %4916 = vmatprep.mubr.f32.mxu1 %v2913_v29 }
 0x493   : > { %5435 = vmatprep.subr.bf16.mxu1 %v6463_v37 }
 0x496   : > { %5437 = vmatpush3.bf16.msra.mxu1 %v6463_v37 }
 0x497   : > { %5439 = vmatprep.subr.bf16.mxu1 %v6484_v12 }
 0x49a   : > { %5441 = vmatpush3.bf16.msra.mxu1 %v6484_v12 }
 0x49b   : > { %5443 = vmatprep.subr.bf16.mxu1 %v6545_v18 }
 0x49e   : > { %5445 = vmatpush3.bf16.msra.mxu1 %v6545_v18 }
 0x49f   : > { %5447 = vmatprep.subr.bf16.mxu1 %v6547_v20 }
 0x4a2   : > { %5449 = vmatpush3.bf16.msra.mxu1 %v6547_v20 }
 0x4a3   : > { %5451 = vmatprep.subr.bf16.mxu1 %v6563_v35 }
 0x4a6   : > { %5453 = vmatpush3.bf16.msra.mxu1 %v6563_v35 }
 0x4a7   : > { %5455 = vmatprep.subr.bf16.mxu1 %v6577_v42 }
 0x4aa   : > { %5457 = vmatpush3.bf16.msra.mxu1 %v6577_v42 }
 0x4ab   : > { %5459 = vmatprep.subr.bf16.mxu1 %v6855_v11 }
 0x4ad   : > { %4917 = vmatmul.mubr.f32.vlgmr.msra.gmra.mrb[4].mxu1 %v2923_v5 }
 0x4ae   : > { %4919 = vmatprep.mubr.f32.mxu1 %v2933_v44  ;;  %5461 = vmatpush3.bf16.msra.mxu1 %v6855_v11 }
 0x4af   : > { %5463 = vmatprep.subr.bf16.mxu1 %v6863_v10 }
 0x4b1   : > { %4920 = vmatmul.mubr.f32.gmra.mrb[6].mxu1 %v2943_v2 }
 0x4b2   : > { %5465 = vmatpush3.bf16.msra.mxu1 %v6863_v10  ;;  %4954 = vmatprep.mubr.f32.mxu1 %v6961_v53 }
 0x4b3   : > { %5467 = vmatprep.subr.bf16.mxu1 %v6875_v62 }
 0x4b6   : > { %5469 = vmatpush3.bf16.msra.mxu1 %v6875_v62 }
 0x4b7   : > { %5471 = vmatprep.subr.bf16.mxu1 %v6886_v63 }
 0x4ba   : > { %5473 = vmatpush3.bf16.msra.mxu1 %v6886_v63 }
 0x4bb   : > { %5475 = vmatprep.subr.bf16.mxu1 %v6894_v21 }
 0x4be   : > { %5477 = vmatpush3.bf16.msra.mxu1 %v6894_v21 }
 0x4bf   : > { %5479 = vmatprep.subr.bf16.mxu1 %v6902_v16 }
 0x4c2   : > { %5481 = vmatpush3.bf16.msra.mxu1 %v6902_v16 }
 0x4c3   : > { %5483 = vmatprep.subr.bf16.mxu1 %v6910_v4 }
 0x4c6   : > { %5485 = vmatpush3.bf16.msra.mxu1 %v6910_v4 }
 0x4c7   : > { %5487 = vmatprep.subr.bf16.mxu1 %v6918_v61 }
 0x4ca   : > { %5489 = vmatpush3.bf16.msra.mxu1 %v6918_v61 }
 0x4cb   : > { %5491 = vmatprep.subr.bf16.mxu1 %v6437_v49 }
 0x4cd   : > { %4955 = vmatmul.mubr.f32.vlgmr.msra.gmra.mrb[4].mxu1 %v6956_v25 }
 0x4ce   : > { %4957 = vmatprep.mubr.f32.mxu1 %v6979_v15  ;;  %5493 = vmatpush3.bf16.msra.mxu1 %v6437_v49  ;;  %v318_v49 = vld [vmem:[#allocation2 + $0x120] sm:$0xff] }
 0x4cf   : > { %5495 = vmatprep.subr.bf16.mxu1 %v6456_v34 }
 0x4d1   : > { %4958 = vmatmul.mubr.f32.gmra.mrb[6].mxu1 %v6977_v58 }
 0x4d2   : > { %5497 = vmatpush3.bf16.msra.mxu1 %v6456_v34  ;;  %4992 = vmatprep.mubr.f32.mxu1 %v6961_v53  ;;  %v319_v34 = vld [vmem:[#allocation2 + $0x128] sm:$0xff] }
 0x4d3   : > { %5499 = vmatprep.subr.bf16.mxu1 %v6463_v37 }
 0x4d6   : > { %5501 = vmatpush3.bf16.msra.mxu1 %v6463_v37  ;;  %v320_v37 = vld [vmem:[#allocation2 + $0x130] sm:$0xff] }
 0x4d7   : > { %5503 = vmatprep.subr.bf16.mxu1 %v6484_v12 }
 0x4da   : > { %5505 = vmatpush3.bf16.msra.mxu1 %v6484_v12  ;;  %v5530_v12 = vpack.c.bf16 %v319_v34, %v318_v49  ;;  %v330_v34 = vld [vmem:[#allocation2 + $0x180] sm:$0xff] }
 0x4db   : > { %5507 = vmatprep.subr.bf16.mxu1 %v6545_v18 }
 0x4dc   : > { %5531 = vmatprep.subr.bf16.mxu0 %v5530_v12 }
 0x4dd   : > { %5533 = vmatpush3.bf16.msra.mxu0 %v5530_v12  ;;  %v332_v12 = vld [vmem:[#allocation2 + $0x190] sm:$0xff] }
 0x4de   : > { %5509 = vmatpush3.bf16.msra.mxu1 %v6545_v18  ;;  %v321_v18 = vld [vmem:[#allocation2 + $0x138] sm:$0xff] }
 0x4df   : > { %5511 = vmatprep.subr.bf16.mxu1 %v6547_v20 }
 0x4e2   : > { %5513 = vmatpush3.bf16.msra.mxu1 %v6547_v20  ;;  %v5534_v20 = vpack.c.bf16 %v321_v18, %v320_v37  ;;  %v331_v37 = vld [vmem:[#allocation2 + $0x188] sm:$0xff] }
 0x4e3   : > { %5515 = vmatprep.subr.bf16.mxu1 %v6563_v35  ;;  %v5554_v18 = vpack.c.bf16 %v331_v37, %v330_v34 }
 0x4e4   : > { %5535 = vmatprep.subr.bf16.mxu0 %v5534_v20 }
 0x4e5   : > { %5537 = vmatpush3.bf16.msra.mxu0 %v5534_v20  ;;  %v333_v20 = vld [vmem:[#allocation2 + $0x198] sm:$0xff] }
 0x4e6   : > { %5517 = vmatpush3.bf16.msra.mxu1 %v6563_v35  ;;  %v5538_v35 = vpack.c.bf16 %v323_v36, %v322_v14  ;;  %v5558_v14 = vpack.c.bf16 %v333_v20, %v332_v12 }
 0x4e7   : > { %5519 = vmatprep.subr.bf16.mxu1 %v6577_v42 }
 0x4e8   : > { %5539 = vmatprep.subr.bf16.mxu0 %v5538_v35 }
 0x4e9   : > { %5541 = vmatpush3.bf16.msra.mxu0 %v5538_v35 }
 0x4ea   : > { %5521 = vmatpush3.bf16.msra.mxu1 %v6577_v42  ;;  %v325_v42 = vld [vmem:[#allocation2 + $0x158] sm:$0xff] }
 0x4eb   : > { %v5542_v8 = vpack.c.bf16 %v325_v42, %v324_v45  ;;  %5555 = vmatprep.subr.bf16.mxu1 %v5554_v18 }
 0x4ed   : > { %4993 = vmatmul.mubr.f32.vlgmr.msra.gmra.mrb[4].mxu1 %v6956_v25  ;;  %5543 = vmatprep.subr.bf16.mxu0 %v5542_v8 }
 0x4ee   : > { %4995 = vmatprep.mubr.f32.mxu1 %v6979_v15  ;;  %5545 = vmatpush3.bf16.msra.mxu0 %v5542_v8 }
 0x4ef   : > { %5547 = vmatprep.subr.bf16.mxu0 %v5546_v57  ;;  %5557 = vmatpush3.bf16.msra.mxu1 %v5554_v18 }
 0x4f0   : > { %5559 = vmatprep.subr.bf16.mxu1 %v5558_v14 }
 0x4f1   : > { %4996 = vmatmul.mubr.f32.gmra.mrb[6].mxu1 %v6977_v58 }
 0x4f2   : > { %5549 = vmatpush3.bf16.msra.mxu0 %v5546_v57 }
 0x4f3   : > { %5551 = vmatprep.subr.bf16.mxu0 %v5550_v30  ;;  %5561 = vmatpush3.bf16.msra.mxu1 %v5558_v14 }
 0x4f6   : > { %5553 = vmatpush3.bf16.msra.mxu0 %v5550_v30 }
 0x5c0   : > { %v4994_v11 = vpop.f32.mrb[4].mxu1 }
 0x5c1   : > { %v5590_v10 = vadd.f32 1e-05, %v4994_v11  ;;  %v3578_v62 = vpop.f32.mrb[5].mxu1 }
 0x5c2   : > { %v5591_v63 = vadd.f32 1e-05, %v3578_v62 }
 0x5c3   : > { %5760 = vrsqrt.f32 %v5590_v10 }
 0x5c4   : > { %5762 = vrsqrt.f32 %v5591_v63  ;;  %v4997_v21 = vpop.f32.mrb[6].mxu1 }
 0x5c5   : > { %v5592_v16 = vadd.f32 1e-05, %v4997_v21  ;;  %v3590_v4 = vpop.f32.mrb[7].mxu1 }
 0x5c6   : > { %v5593_v61 = vadd.f32 1e-05, %v3590_v4  ;;  %v335_v4 = vld [vmem:[#allocation2 + $0x1a8] sm:$0xff] }
 0x5c7   : > { %5764 = vrsqrt.f32 %v5592_v16  ;;  %v334_v16 = vld [vmem:[#allocation2 + $0x1a0] sm:$0xff] }
 0x5c8   : > { %5766 = vrsqrt.f32 %v5593_v61  ;;  %v5562_v61 = vpack.c.bf16 %v335_v4, %v334_v16 }
 0x5ca   : > { %5563 = vmatprep.subr.bf16.mxu1 %v5562_v61 }
 0x5cb   : > { %5565 = vmatpush3.bf16.msra.mxu1 %v5562_v61 }
 0x5cd   : > { %v5761_v0 = vpop.eup %5760 }
 0x5ce   : > { %v5763_v22 = vpop.eup %5762  ;;  %v3605_v60 = vmul.f32 %v5761_v0, %v6947_v26  ;;  %v336_v0 = vld [vmem:[#allocation2 + $0x1b0] sm:$0xff] }
 0x5cf   : > { %v3604_v25 = vmul.f32 %v5763_v22, %v6950_v17  ;;  %v338_v22 = vld [vmem:[#allocation2 + $0x1c0] sm:$0xff] }
 0x5d0   : > { %v3613_v13 = vmul.f32 %v4043_v9, %v3605_v60 }
 0x5d1   : > { %v5765_v53 = vpop.eup %5764  ;;  %v3612_v33 = vmul.f32 %v4043_v9, %v3604_v25 }
 0x5d2   : > { %v5767_v24 = vpop.eup %5766  ;;  %v3621_v41 = vadd.f32 %v4044_v47, %v3613_v13  ;;  %v3607_v32 = vmul.f32 %v5765_v53, %v6959_v50  ;;  %v4045_v50 = vld [vmem:[#allocation5 + $0x3] ss:$0 sm:$0xff]  ;;  %v340_v13 = vld [vmem:[#allocation2 + $0x1d0] sm:$0xff]  ;;  %v341_v53 = vld [vmem:[#allocation2 + $0x1d8] sm:$0xff] }
 0x5d3   : > { %v3620_v5 = vadd.f32 %v4044_v47, %v3612_v33  ;;  %v3606_v58 = vmul.f32 %v5767_v24, %v6964_v39  ;;  %v5574_v33 = vpack.c.bf16 %v341_v53, %v340_v13  ;;  %v342_v24 = vld [vmem:[#allocation2 + $0x1e0] sm:$0xff] }
 0x5d4   : > { %v3615_v15 = vmul.f32 %v4043_v9, %v3607_v32  ;;  %v3625_v6 = vmax.f32 %v3621_v41, 0.0  ;;  %v343_v41 = vld [vmem:[#allocation2 + $0x1e8] sm:$0xff] }
 0x5d5   : > { %v3624_v29 = vmax.f32 %v3620_v5, 0.0  ;;  %v3614_v52 = vmul.f32 %v4043_v9, %v3606_v58  ;;  %v337_v9 = vld [vmem:[#allocation2 + $0x1b8] sm:$0xff]  ;;  %v5578_v32 = vpack.c.bf16 %v343_v41, %v342_v24  ;;  %v344_v5 = vld [vmem:[#allocation2 + $0x1f0] sm:$0xff] }
 0x5d6   : > { %v3623_v38 = vadd.f32 %v4044_v47, %v3615_v15  ;;  %v5566_v60 = vpack.c.bf16 %v337_v9, %v336_v0  ;;  %v345_v58 = vld [vmem:[#allocation2 + $0x1f8] sm:$0xff] }
 0x5d7   : > { %5030 = vmatprep.mubr.f32.mxu0 %v3624_v29  ;;  %v3622_v26 = vadd.f32 %v4044_v47, %v3614_v52  ;;  %v339_v47 = vld [vmem:[#allocation2 + $0x1c8] sm:$0xff]  ;;  %v5582_v15 = vpack.c.bf16 %v345_v58, %v344_v5 }
 0x5d8   : > { %5031 = vmatmul.mubr.f32.vlgmr.msra.gmra.mrb[12].mxu0 %v3625_v6  ;;  %v3627_v28 = vmax.f32 %v3623_v38, 0.0  ;;  %v5570_v25 = vpack.c.bf16 %v339_v47, %v338_v22  ;;  %5567 = vmatprep.subr.bf16.mxu1 %v5566_v60 }
 0x5d9   : > { %v3626_v17 = vmax.f32 %v3622_v26, 0.0  ;;  %5569 = vmatpush3.bf16.msra.mxu1 %v5566_v60 }
 0x5da   : > { %5571 = vmatprep.subr.bf16.mxu1 %v5570_v25 }
 0x5db   : > { %5033 = vmatprep.mubr.f32.mxu0 %v3626_v17 }
 0x5dc   : > { %5034 = vmatmul.mubr.f32.gmra.mrb[14].mxu0 %v3627_v28 }
 0x5dd   : > { %5573 = vmatpush3.bf16.msra.mxu1 %v5570_v25 }
 0x5de   : > { %5575 = vmatprep.subr.bf16.mxu1 %v5574_v33 }
 0x5e1   : > { %5577 = vmatpush3.bf16.msra.mxu1 %v5574_v33 }
 0x5e2   : > { %5579 = vmatprep.subr.bf16.mxu1 %v5578_v32 }
 0x5e5   : > { %5581 = vmatpush3.bf16.msra.mxu1 %v5578_v32 }
 0x5e6   : > { %5583 = vmatprep.subr.bf16.mxu1 %v5582_v15 }
 0x5e9   : > { %5585 = vmatpush3.bf16.msra.mxu1 %v5582_v15 }
 0x6ab   : > { %v5032_v2 = vpop.f32.mrb[12].mxu0 }
 0x6ac   : > { %v3698_v39 = vpop.f32.mrb[13].mxu0  ;;  %v3704_v59 = vadd.f32 %v5032_v2, %v4045_v50 }
 0x6ad   : > { %v3699_v44 = vadd.f32 %v4045_v50, %v3698_v39 }
 0x6ae   : > { %v3722_v31 = vadd.f32 %v3718_v46, %v3704_v59 }
 0x6af   : > { %v5035_v48 = vpop.f32.mrb[14].mxu0  ;;  %v3721_v23 = vadd.f32 %v3717_v1, %v3699_v44 }
 0x6b0   : > { %v3708_v43 = vpop.f32.mrb[15].mxu0  ;;  %v3714_v56 = vadd.f32 %v5035_v48, %v4045_v50  ;;  %v4046_v48 = vld [vmem:[#allocation5 + $0x4] ss:$0 sm:$0xff] }
 0x6b1   : > { %v3709_v7 = vadd.f32 %v4045_v50, %v3708_v43  ;;  %3725 = vadd.xlane.f32.xlu0 %v3721_v23  ;;  %v4047_v43 = vld [vmem:[#allocation5 + $0x5] ss:$0 sm:$0xff] }
 0x6b2   : > { %v3724_v49 = vadd.f32 %v3720_v51, %v3714_v56 }
 0x6b3   : > { %v3723_v40 = vadd.f32 %v3719_v27, %v3709_v7 }
 0x6b5   : > { %3729 = vadd.xlane.f32.xlu1 %v3723_v40  ;;  %3727 = vadd.xlane.f32.xlu0 %v3722_v31 }
 0x6b9   : > { %3731 = vadd.xlane.f32.xlu1 %v3724_v49 }
 0x73e   : > { %v3726_v36 = vpop.xlane.xlu0 %3725 }
 0x73f   : > { %v3734_v35 = vmul.f32 0.0078125, %v3726_v36 }
 0x741   : > { %v7114_v45 = vsub.f32 %v3721_v23, %v3734_v35 }
 0x742   : > { %v3730_v42 = vpop.xlane.xlu1 %3729  ;;  %v3728_v8 = vpop.xlane.xlu0 %3727 }
 0x743   : > { %v3736_v55 = vmul.f32 0.0078125, %v3730_v42  ;;  %v3735_v3 = vmul.f32 0.0078125, %v3728_v8  ;;  %v3742_v57 = vmul.f32 %v7114_v45, %v7114_v45  ;;  %v4048_v8 = vld [vmem:[#allocation5 + $0x6] ss:$0 sm:$0xff] }
 0x745   : > { %v7118_v54 = vsub.f32 %v3723_v40, %v3736_v55  ;;  %v7120_v19 = vsub.f32 %v3722_v31, %v3735_v3  ;;  %3746 = vadd.xlane.f32.xlu0 %v3742_v57 }
 0x746   : > { %v3732_v30 = vpop.xlane.xlu1 %3731 }
 0x747   : > { %v3737_v11 = vmul.f32 0.0078125, %v3732_v30  ;;  %v3744_v10 = vmul.f32 %v7118_v54, %v7118_v54  ;;  %v3743_v62 = vmul.f32 %v7120_v19, %v7120_v19 }
 0x749   : > { %v7126_v63 = vsub.f32 %v3724_v49, %v3737_v11  ;;  %3750 = vadd.xlane.f32.xlu0 %v3744_v10  ;;  %3748 = vadd.xlane.f32.xlu1 %v3743_v62 }
 0x74b   : > { %v3745_v21 = vmul.f32 %v7126_v63, %v7126_v63 }
 0x74d   : > { %3752 = vadd.xlane.f32.xlu1 %v3745_v21 }
 0x7d2   : > { %v3747_v29 = vpop.xlane.xlu0 %3746 }
 0x7d3   : > { %v3754_v52 = vmul.f32 0.0078125, %v3747_v29 }
 0x7d5   : > { %v3758_v6 = vadd.f32 1e-05, %v3754_v52 }
 0x7d6   : > { %v3749_v38 = vpop.xlane.xlu1 %3748  ;;  %v3751_v26 = vpop.xlane.xlu0 %3750 }
 0x7d7   : > { %5768 = vrsqrt.f32 %v3758_v6  ;;  %v3755_v17 = vmul.f32 0.0078125, %v3749_v38  ;;  %v3756_v28 = vmul.f32 0.0078125, %v3751_v26 }
 0x7d9   : > { %v3759_v50 = vadd.f32 1e-05, %v3755_v17  ;;  %v3760_v2 = vadd.f32 1e-05, %v3756_v28 }
 0x7da   : > { %v3753_v39 = vpop.xlane.xlu1 %3752 }
 0x7db   : > { %5770 = vrsqrt.f32 %v3759_v50  ;;  %v3757_v1 = vmul.f32 0.0078125, %v3753_v39 }
 0x7dc   : > { %5772 = vrsqrt.f32 %v3760_v2 }
 0x7dd   : > { %v3761_v44 = vadd.f32 1e-05, %v3757_v1 }
 0x7df   : > { %5774 = vrsqrt.f32 %v3761_v44 }
 0x7e1   : > { %v5769_v59 = vpop.eup %5768 }
 0x7e2   : > { %v3766_v23 = vmul.f32 %v5769_v59, %v7114_v45 }
 0x7e4   : > { %v3774_v27 = vmul.f32 %v4046_v48, %v3766_v23 }
 0x7e5   : > { %v5771_v46 = vpop.eup %5770 }
 0x7e6   : > { %v5773_v7 = vpop.eup %5772  ;;  %v3767_v56 = vmul.f32 %v5771_v46, %v7120_v19  ;;  %v3782_v40 = vadd.f32 %v4047_v43, %v3774_v27 }
 0x7e7   : > { %v3768_v31 = vmul.f32 %v5773_v7, %v7118_v54 }
 0x7e8   : > { %v3786_v51 = vmax.f32 %v3782_v40, 0.0  ;;  %v3775_v49 = vmul.f32 %v4046_v48, %v3767_v56 }
 0x7e9   : > { %v5775_v34 = vpop.eup %5774  ;;  %v3776_v37 = vmul.f32 %v4046_v48, %v3768_v31 }
 0x7ea   : > { %5068 = vmatprep.mubr.f32.mxu1 %v3786_v51  ;;  %v3783_v12 = vadd.f32 %v4047_v43, %v3775_v49  ;;  %v3769_v18 = vmul.f32 %v5775_v34, %v7126_v63 }
 0x7eb   : > { %v3784_v20 = vadd.f32 %v4047_v43, %v3776_v37 }
 0x7ec   : > { %v3787_v14 = vmax.f32 %v3783_v12, 0.0  ;;  %v3777_v36 = vmul.f32 %v4046_v48, %v3769_v18 }
 0x7ed   : > { %v3788_v35 = vmax.f32 %v3784_v20, 0.0 }
 0x7ee   : > { %5069 = vmatmul.mubr.f32.vlgmr.msra.gmra.mrb[8].mxu1 %v3787_v14  ;;  %v3785_v45 = vadd.f32 %v4047_v43, %v3777_v36 }
 0x7ef   : > { %5071 = vmatprep.mubr.f32.mxu1 %v3788_v35 }
 0x7f0   : > { %v3789_v42 = vmax.f32 %v3785_v45, 0.0 }
 0x7f2   : > { %5072 = vmatmul.mubr.f32.gmra.mrb[10].mxu1 %v3789_v42 }
 0x8c1   : > { %v5070_v55 = vpop.f32.mrb[8].mxu1 }
 0x8c2   : > { %v3866_v3 = vadd.f32 %v5070_v55, %v4048_v8  ;;  %v3860_v57 = vpop.f32.mrb[9].mxu1 }
 0x8c3   : > { %v3861_v54 = vadd.f32 %v4048_v8, %v3860_v57 }
 0x8c4   : > { %3880 = vst [vmem:[%s262_s23 + $0x8] sm:$0xff] %v3866_v3 }
 0x8c5   : > { %3879 = vst [vmem:[%s262_s23] sm:$0xff] %v3861_v54  ;;  %v5073_v19 = vpop.f32.mrb[10].mxu1 }
 0x8c6   : > { %v3876_v30 = vadd.f32 %v5073_v19, %v4048_v8  ;;  %v3870_v11 = vpop.f32.mrb[11].mxu1 }
 0x8c7   : > { %v3871_v10 = vadd.f32 %v4048_v8, %v3870_v11 }
 0x8c8   : > { %3882 = vst [vmem:[%s262_s23 + $0x18] sm:$0xff] %v3876_v30 }
 0x8c9   : > { %3881 = vst [vmem:[%s262_s23 + $0x10] sm:$0xff] %v3871_v10 }
 0x8ca   : > { %5845 = shalt.err (!%p5842_p11)
}
 0x8cb   : > { %s5846_s13 = scalar_lea.hbm %s7141_s26, 512  ;;  %s5850_s16 = scalar_lea.hbm %s7189_s5, 1024 }
 0x8cc   : > { %p5847_p13 = scmp.ne.s32.totalorder %s7141_s26, %s5846_s13  ;;  %p5851_p6 = scmp.lt.u32.totalorder %s7141_s26, %s7189_s5 }
 0x8cd   : > { %p5852_p9 = scmp.lt.u32.totalorder %s5850_s16, %s5846_s13  ;;  %p5854_p12 = scmp.lt.u32.totalorder %s5846_s13, %s7141_s26 }
 0x8ce   : > { %p5848_p5 = pnand %p5847_p13, %p7240_p1 }
 0x8cf   : > { %p5853_p10 = por %p5852_p9, %p5851_p6 }
 0x8d0   : > { %p5849_p0 = pneg %p5848_p5 }
 0x8d1   : > { %p5855_p2 = por %p5854_p12, %p5853_p10 }
 0x8d3   : > { %p5856_p3 = pnand %p5855_p2, %p5849_p0 }
 0x8d5   : > { %5859 = shalt.err (!%p5856_p3)
}
 0x8d6   : > { %s5915_s23 = smov 128   ;;  %s5916_s8 = smov 8  }
 0x8d7   : > { %5682 = dma.vmem_to_hbm [thread:$0]  (%p7240_p1), %s7136_s25, 512, %s7141_s26, %s7143_s6, %s5915_s23, %s5915_s23, %s5916_s8  }
 0x8d8 PF: > { %p5699_p4 = scmp.ge.s32.totalorder %s5902_s21, 2  ;;  %s3912_s30 = sand.u32 1, %s5890_s18  }
 0x8d9   : > { %p7241_p7 = scmp.ne.s32.totalorder %s7210_s29, 0  ;;  %s3913_s10 = scalar_lea.sflag [#allocation4], %s3912_s30 }
 0x8db   : > { %p5692_p8 = pnand %p5699_p4, %p7241_p7 }
 0x8dd   : > { %5885 = dma.done.wait (!%p5692_p8), %s3913_s10, 512  }
 0x8de   : > { %5887 = vsyncadd (!%p5692_p8), %s3913_s10, 4294966784  ;;  %p17_p11 = scmp.ge.s32.totalorder %s5972_s24, 4   ;;  %s7242_s18 = smov %s5894_s19 }
 0x8df   : > { %s7243_s19 = smov %s5898_s20  ;;  %s7244_s20 = smov %s5983_s27 }
 0x8e0   : > { %s7245_s21 = smov %s5972_s24  ;;  %19 = sbr.rel (!%p17_p11) target bundleno = 5 (0x5), region = 87 }
 0x8e7   :  { %3918 = vsyncpa [#allocation3], 1 }
 0x8e8   :  { %3920 = vsyncpa [#allocation3 + $0x1], 1 }
 0x8e9   :  { %3921 = vsyncpa [#allocation6], 1 }
 0x8ea   :  { %3922 = vsyncpa [#allocation4], 1 }
 0x8eb   :  { %3924 = vsyncpa [#allocation4 + $0x1], 1 }

</bundles_post_ra>
